<compile_context>
chip_gen: v5e
topology: v5e:2x2
jax: 0.10.0
libtpu: 0.0.40
codegen_flags: <defaults>
</compile_context>

<pallas_src>
import numpy as np
import jax
import jax.numpy as jnp
from jax.experimental import pallas as pl
from jax.experimental.pallas import tpu as pltpu

# ---- tiny synthetic T5 config ----
VOCAB = 128
D_MODEL = 32
N_HEADS = 2
D_KV = 16
INNER = N_HEADS * D_KV
D_FF = 64
REL_BUCKETS = 32
REL_MAX_DIST = 128
EPS = 1e-6
NEG_INF = -1e9

# target rows per grid step (BB*S): multiple of 256 fills the v6e/v7x MXU (and 2x the v5e MXU)
_TARGET_ROWS = 256

# packed-LayerNorm row indices
_LN_ENC_SA, _LN_ENC_FF, _LN_ENC_FINAL = 0, 1, 2
_LN_DEC_SA, _LN_DEC_CA, _LN_DEC_FF, _LN_DEC_FINAL = 3, 4, 5, 6

_MAT_KEYS = (
    "enc_sa_qkv", "enc_sa_o", "enc_ff_wi", "enc_ff_wo",
    "dec_sa_qkv", "dec_sa_o", "dec_ca_q", "dec_ca_kv", "dec_ca_o",
    "dec_ff_wi", "dec_ff_wo", "embed_t",
)


# ---------------- in-kernel helpers (traced inside the fused kernel) ----------------
def _rmsnorm(x, w):
    # T5 LayerNorm: no mean subtraction, no bias. f32 math.
    var = jnp.mean(x * x, axis=-1, keepdims=True)
    return x * jax.lax.rsqrt(var + EPS) * w


def _mha(q_all, k_all, v_all, w_o, bias):
    """Multi-head attention, batched over the BB examples of this grid step.

    q_all/k_all/v_all: (BB, Sq|Skv, INNER); w_o: (INNER, D_MODEL);
    bias: (H, Sq, Skv) or None.  Returns (BB*Sq, D_MODEL).
    T5 attention: NO 1/sqrt(d_kv) scaling, additive position bias.
    """
    bb, sq, _ = q_all.shape
    acc = None
    for h in range(N_HEADS):                      # static 2-iteration loop
        sl = slice(h * D_KV, (h + 1) * D_KV)
        q = q_all[:, :, sl]                       # (BB, Sq, dk)
        k = k_all[:, :, sl]                       # (BB, Skv, dk)
        v = v_all[:, :, sl]                       # (BB, Skv, dk)
        # scores: contract last dims (no k.T / XLU transpose), batch over BB
        s = jax.lax.dot_general(q, k, (((2,), (2,)), ((0,), (0,))),
                                preferred_element_type=jnp.float32)   # (BB, Sq, Skv)
        if bias is not None:
            s = s + bias[h][None, :, :]
        m = jnp.max(s, axis=-1, keepdims=True)
        p = jnp.exp(s - m)
        p = p * pl.reciprocal(jnp.sum(p, axis=-1, keepdims=True), approx=False)
        # context: (BB, Sq, Skv) x (BB, Skv, dk) -> (BB, Sq, dk)
        o_h = jax.lax.dot_general(p, v, (((2,), (1,)), ((0,), (0,))),
                                  preferred_element_type=jnp.float32)
        # fold the output projection in per head (flat over tokens, MXU-friendly M)
        proj = jnp.dot(o_h.reshape(bb * sq, D_KV), w_o[sl, :],
                       preferred_element_type=jnp.float32)            # (BB*Sq, D)
        acc = proj if acc is None else acc + proj
    return acc


# ---------------- the single fused forward kernel (BB examples per grid step) ----------
def _t5_forward_kernel(
    enc_emb_ref, dec_emb_ref, bias_ref, ln_ref,
    enc_sa_qkv_ref, enc_sa_o_ref, enc_ff_wi_ref, enc_ff_wo_ref,
    dec_sa_qkv_ref, dec_sa_o_ref, dec_ca_q_ref, dec_ca_kv_ref, dec_ca_o_ref,
    dec_ff_wi_ref, dec_ff_wo_ref, embed_t_ref,
    logits_ref,
):
    bb, s, d = enc_emb_ref.shape
    m = bb * s

    ln = ln_ref[...]                                   # (8, D) packed LayerNorm weights

    def ln_w(i):
        return ln[i:i + 1, :]                          # (1, D) static slice

    bias_all = bias_ref[...]                           # (2H, S, S)
    enc_bias = bias_all[:N_HEADS]
    dec_bias = bias_all[N_HEADS:]

    # ================= encoder layer =================
    h = enc_emb_ref[...].reshape(m, d)                 # (BB*S, D) token slab

    x = _rmsnorm(h, ln_w(_LN_ENC_SA))
    qkv = jnp.dot(x, enc_sa_qkv_ref[...], preferred_element_type=jnp.float32)
    qkv = qkv.reshape(bb, s, 3 * INNER)
    q, k, v = qkv[..., :INNER], qkv[..., INNER:2 * INNER], qkv[..., 2 * INNER:]
    h = h + _mha(q, k, v, enc_sa_o_ref[...], enc_bias)

    x = _rmsnorm(h, ln_w(_LN_ENC_FF))
    x = jnp.maximum(jnp.dot(x, enc_ff_wi_ref[...], preferred_element_type=jnp.float32), 0.0)
    h = h + jnp.dot(x, enc_ff_wo_ref[...], preferred_element_type=jnp.float32)

    enc_out = _rmsnorm(h, ln_w(_LN_ENC_FINAL))         # (BB*S, D)

    # ================= decoder layer =================
    h = dec_emb_ref[...].reshape(m, d)

    # causal self-attention (rel-pos bias + causal mask pre-folded into dec_bias)
    x = _rmsnorm(h, ln_w(_LN_DEC_SA))
    qkv = jnp.dot(x, dec_sa_qkv_ref[...], preferred_element_type=jnp.float32)
    qkv = qkv.reshape(bb, s, 3 * INNER)
    q, k, v = qkv[..., :INNER], qkv[..., INNER:2 * INNER], qkv[..., 2 * INNER:]
    h = h + _mha(q, k, v, dec_sa_o_ref[...], dec_bias)

    # cross-attention (no position bias at all)
    x = _rmsnorm(h, ln_w(_LN_DEC_CA))
    q = jnp.dot(x, dec_ca_q_ref[...], preferred_element_type=jnp.float32).reshape(bb, s, INNER)
    kv = jnp.dot(enc_out, dec_ca_kv_ref[...], preferred_element_type=jnp.float32)
    kv = kv.reshape(bb, s, 2 * INNER)
    k, v = kv[..., :INNER], kv[..., INNER:]
    h = h + _mha(q, k, v, dec_ca_o_ref[...], None)

    # FFN
    x = _rmsnorm(h, ln_w(_LN_DEC_FF))
    x = jnp.maximum(jnp.dot(x, dec_ff_wi_ref[...], preferred_element_type=jnp.float32), 0.0)
    h = h + jnp.dot(x, dec_ff_wo_ref[...], preferred_element_type=jnp.float32)

    dec_out = _rmsnorm(h, ln_w(_LN_DEC_FINAL))

    # tied LM head (HF scales decoder output by d_model ** -0.5); lane-dense (BB*S, 128) store.
    logits = jnp.dot(dec_out * (D_MODEL ** -0.5), embed_t_ref[...],
                     preferred_element_type=jnp.float32)
    logits_ref[...] = logits.reshape(bb, s, VOCAB)


# ---------------- plain-JAX glue: rel-pos buckets (computed ONCE at init) ----------------
def _rel_pos_bucket(rel_pos, bidirectional):
    num_buckets = REL_BUCKETS
    ret = jnp.zeros_like(rel_pos)
    if bidirectional:
        num_buckets //= 2
        ret = ret + (rel_pos > 0).astype(jnp.int32) * num_buckets
        rel_pos = jnp.abs(rel_pos)
    else:
        rel_pos = -jnp.minimum(rel_pos, 0)
    max_exact = num_buckets // 2
    is_small = rel_pos < max_exact
    rel_f = jnp.maximum(rel_pos.astype(jnp.float32), 1.0)
    large = max_exact + (jnp.log(rel_f / max_exact)
                         / np.log(REL_MAX_DIST / max_exact)
                         * (num_buckets - max_exact)).astype(jnp.int32)
    large = jnp.minimum(large, num_buckets - 1)
    return ret + jnp.where(is_small, rel_pos, large)


def compute_bias(rel_emb, q_len, k_len, bidirectional):
    ctx = jnp.arange(q_len)[:, None]
    mem = jnp.arange(k_len)[None, :]
    buckets = _rel_pos_bucket(mem - ctx, bidirectional)            # (q, k)
    vals = rel_emb[buckets]                                        # (q, k, H)
    return jnp.transpose(vals, (2, 0, 1)).astype(jnp.float32)      # (H, q, k)


def make_bias_all(enc_rel, dec_rel, seq_len):
    """Packed (2H, S, S) bias: [0:H] encoder bidirectional, [H:2H] decoder causal (+mask)."""
    enc_bias = compute_bias(enc_rel, seq_len, seq_len, bidirectional=True)
    dec_bias = compute_bias(dec_rel, seq_len, seq_len, bidirectional=False)
    causal = jnp.where(jnp.arange(seq_len)[None, :] > jnp.arange(seq_len)[:, None], NEG_INF, 0.0)
    dec_bias = dec_bias + causal[None, :, :]
    return jnp.concatenate([enc_bias, dec_bias], axis=0)


# ---------------- wrapper: one pallas_call for the whole batched forward ----------------
def qa_classifier_forward(params, input_ids, decoder_input_ids, block_batch=None):
    B, S = input_ids.shape

    # Batch block size: aim for BB*S ~= 256 MXU rows per grid step (cap at B).
    if block_batch is None:
        BB = max(1, _TARGET_ROWS // S)
    else:
        BB = max(1, int(block_batch))
    BB = min(BB, B)
    num_blocks = pl.cdiv(B, BB)
    B_pad = num_blocks * BB

    # Pad the batch with pad-token examples so every grid step is full; slice logits back below.
    if B_pad != B:
        pad = B_pad - B
        input_ids = jnp.concatenate(
            [input_ids, jnp.zeros((pad, S), input_ids.dtype)], axis=0)
        decoder_input_ids = jnp.concatenate(
            [decoder_input_ids, jnp.zeros((pad, S), decoder_input_ids.dtype)], axis=0)

    # Embedding gathers (data-dependent; tiny, done once in plain JAX).
    # TODO(synk): HF T5ForConditionalGeneration.forward(input_ids) alone raises without
    # decoder_input_ids/labels; here decoder_start_token_id (=0, pad) is fed as decoder input.
    enc_emb = params["embed"][input_ids]                           # (B_pad, S, D) f32
    dec_emb = params["embed"][decoder_input_ids]                   # (B_pad, S, D) f32

    # Relative-position biases: precomputed at init for the fixed S; recompute only on mismatch.
    bias_all = params.get("bias_all")
    if bias_all is None or bias_all.shape[-1] != S:
        bias_all = make_bias_all(params["enc_rel"], params["dec_rel"], S)

    def act_spec(last):        # per-grid-step block of BB examples
        return pl.BlockSpec((BB, S, last), lambda b: (b, 0, 0))

    def shared(arr):           # same block every grid step (weights / biases): no re-DMA
        return pl.BlockSpec(arr.shape, lambda b, _n=arr.ndim: (0,) * _n)

    mats = [params[k] for k in _MAT_KEYS]
    in_specs = ([act_spec(D_MODEL), act_spec(D_MODEL),
                 shared(bias_all), shared(params["ln_pack"])]
                + [shared(w) for w in mats])

    out = pl.pallas_call(
        _t5_forward_kernel,
        out_shape=jax.ShapeDtypeStruct((B_pad, S, VOCAB), jnp.float32),
        grid=(num_blocks,),
        in_specs=in_specs,
        out_specs=act_spec(VOCAB),
        compiler_params=pltpu.CompilerParams(dimension_semantics=("parallel",)),
    )(enc_emb, dec_emb, bias_all, params["ln_pack"], *mats)

    return out[:B]


# ---------------- deterministic synthetic params ----------------
def init_params(key, seq_len=None):
    keys = iter(jax.random.split(key, 32))

    def w(shape, scale=0.05):
        return jax.random.normal(next(keys), shape, jnp.float32) * scale

    p = {"embed": w((VOCAB, D_MODEL))}
    p["embed_t"] = p["embed"].T                      # precomputed once for the tied LM head

    # encoder layer (Q/K/V fused into one weight)
    p["enc_sa_qkv"] = w((D_MODEL, 3 * INNER))
    p["enc_sa_o"] = w((INNER, D_MODEL))
    p["enc_rel"] = w((REL_BUCKETS, N_HEADS))
    p["enc_ff_wi"] = w((D_MODEL, D_FF))
    p["enc_ff_wo"] = w((D_FF, D_MODEL))

    # decoder layer (self-attn QKV fused; cross-attn K/V fused)
    p["dec_sa_qkv"] = w((D_MODEL, 3 * INNER))
    p["dec_sa_o"] = w((INNER, D_MODEL))
    p["dec_rel"] = w((REL_BUCKETS, N_HEADS))
    p["dec_ca_q"] = w((D_MODEL, INNER))
    p["dec_ca_kv"] = w((D_MODEL, 2 * INNER))
    p["dec_ca_o"] = w((INNER, D_MODEL))
    p["dec_ff_wi"] = w((D_MODEL, D_FF))
    p["dec_ff_wo"] = w((D_FF, D_MODEL))

    # all 7 T5 LayerNorm weights (== 1.0 here) packed into one sublane-padded (8, D) slab
    p["ln_pack"] = jnp.ones((8, D_MODEL), jnp.float32)

    # precompute packed position biases once for the fixed sequence length
    if seq_len is not None:
        p["bias_all"] = make_bias_all(p["enc_rel"], p["dec_rel"], seq_len)
    return p


if __name__ == "__main__":
    key = jax.random.PRNGKey(0)
    pkey, dkey = jax.random.split(key)

    B, S = 2, 8
    params = init_params(pkey, seq_len=S)

    input_ids = jax.random.randint(dkey, (B, S), 0, VOCAB, dtype=jnp.int32)
    decoder_input_ids = jnp.zeros((B, S), jnp.int32)

    fwd = jax.jit(qa_classifier_forward)
    logits = fwd(params, input_ids, decoder_input_ids)
    jax.block_until_ready(logits)
    assert logits.shape == (B, S, VOCAB) and logits.dtype == jnp.float32

    # also exercise the batch-blocked multi-step / padded-batch path (BB=32 -> 256 MXU rows)
    B2 = 33
    ids2 = jax.random.randint(jax.random.PRNGKey(1), (B2, S), 0, VOCAB, dtype=jnp.int32)
    dec2 = jnp.zeros((B2, S), jnp.int32)
    logits2 = fwd(params, ids2, dec2)
    jax.block_until_ready(logits2)
    assert logits2.shape == (B2, S, VOCAB)

    print("KERNEL_OK")
</pallas_src>

<mosaic_0001>
module attributes {stable_mosaic.version = 11 : i64} {
  func.func @_t5_forward_kernel(%arg0: i32, %arg1: memref<2x8x32xf32, #tpu.memory_space<vmem>>, %arg2: memref<2x8x32xf32, #tpu.memory_space<vmem>>, %arg3: memref<4x8x8xf32, #tpu.memory_space<vmem>>, %arg4: memref<8x32xf32, #tpu.memory_space<vmem>>, %arg5: memref<32x96xf32, #tpu.memory_space<vmem>>, %arg6: memref<32x32xf32, #tpu.memory_space<vmem>>, %arg7: memref<32x64xf32, #tpu.memory_space<vmem>>, %arg8: memref<64x32xf32, #tpu.memory_space<vmem>>, %arg9: memref<32x96xf32, #tpu.memory_space<vmem>>, %arg10: memref<32x32xf32, #tpu.memory_space<vmem>>, %arg11: memref<32x32xf32, #tpu.memory_space<vmem>>, %arg12: memref<32x64xf32, #tpu.memory_space<vmem>>, %arg13: memref<32x32xf32, #tpu.memory_space<vmem>>, %arg14: memref<32x64xf32, #tpu.memory_space<vmem>>, %arg15: memref<64x32xf32, #tpu.memory_space<vmem>>, %arg16: memref<32x128xf32, #tpu.memory_space<vmem>>, %arg17: memref<2x8x128xf32, #tpu.memory_space<vmem>>) attributes {dimension_semantics = [#tpu.dimension_semantics<parallel>], iteration_bounds = array<i64: 1>, scalar_prefetch = 0 : i64, scratch_operands = 0 : i64, tpu.core_type = #tpu.core_type<tc>, window_params = [{transform_indices = @transform_0, window_bounds = array<i64: 2, 8, 32>}, {transform_indices = @transform_1, window_bounds = array<i64: 2, 8, 32>}, {pipeline_mode = #tpu.pipeline_mode<synchronous>, transform_indices = @transform_2, window_bounds = array<i64: 4, 8, 8>}, {pipeline_mode = #tpu.pipeline_mode<synchronous>, transform_indices = @transform_3, window_bounds = array<i64: 8, 32>}, {pipeline_mode = #tpu.pipeline_mode<synchronous>, transform_indices = @transform_4, window_bounds = array<i64: 32, 96>}, {pipeline_mode = #tpu.pipeline_mode<synchronous>, transform_indices = @transform_5, window_bounds = array<i64: 32, 32>}, {pipeline_mode = #tpu.pipeline_mode<synchronous>, transform_indices = @transform_6, window_bounds = array<i64: 32, 64>}, {pipeline_mode = #tpu.pipeline_mode<synchronous>, transform_indices = @transform_7, window_bounds = array<i64: 64, 32>}, {pipeline_mode = #tpu.pipeline_mode<synchronous>, transform_indices = @transform_8, window_bounds = array<i64: 32, 96>}, {pipeline_mode = #tpu.pipeline_mode<synchronous>, transform_indices = @transform_9, window_bounds = array<i64: 32, 32>}, {pipeline_mode = #tpu.pipeline_mode<synchronous>, transform_indices = @transform_10, window_bounds = array<i64: 32, 32>}, {pipeline_mode = #tpu.pipeline_mode<synchronous>, transform_indices = @transform_11, window_bounds = array<i64: 32, 64>}, {pipeline_mode = #tpu.pipeline_mode<synchronous>, transform_indices = @transform_12, window_bounds = array<i64: 32, 32>}, {pipeline_mode = #tpu.pipeline_mode<synchronous>, transform_indices = @transform_13, window_bounds = array<i64: 32, 64>}, {pipeline_mode = #tpu.pipeline_mode<synchronous>, transform_indices = @transform_14, window_bounds = array<i64: 64, 32>}, {pipeline_mode = #tpu.pipeline_mode<synchronous>, transform_indices = @transform_15, window_bounds = array<i64: 32, 128>}, {transform_indices = @transform_16, window_bounds = array<i64: 2, 8, 128>}]} {
    %c0 = arith.constant 0 : index
    %c0_0 = arith.constant 0 : index
    %0 = vector.load %arg4[%c0, %c0_0] : memref<8x32xf32, #tpu.memory_space<vmem>>, vector<8x32xf32>
    %c0_1 = arith.constant 0 : index
    %c0_2 = arith.constant 0 : index
    %c0_3 = arith.constant 0 : index
    %1 = vector.load %arg3[%c0_1, %c0_2, %c0_3] : memref<4x8x8xf32, #tpu.memory_space<vmem>>, vector<4x8x8xf32>
    %2 = vector.extract_strided_slice %1 {offsets = [0, 0, 0], sizes = [2, 8, 8], strides = [1, 1, 1]} : vector<4x8x8xf32> to vector<2x8x8xf32>
    %3 = vector.extract_strided_slice %1 {offsets = [2, 0, 0], sizes = [2, 8, 8], strides = [1, 1, 1]} : vector<4x8x8xf32> to vector<2x8x8xf32>
    %c0_4 = arith.constant 0 : index
    %c0_5 = arith.constant 0 : index
    %c0_6 = arith.constant 0 : index
    %4 = vector.load %arg1[%c0_4, %c0_5, %c0_6] : memref<2x8x32xf32, #tpu.memory_space<vmem>>, vector<2x8x32xf32>
    %5 = vector.shape_cast %4 : vector<2x8x32xf32> to vector<16x32xf32>
    %6 = vector.extract_strided_slice %0 {offsets = [0, 0], sizes = [1, 32], strides = [1, 1]} : vector<8x32xf32> to vector<1x32xf32>
    %7 = arith.mulf %5, %5 : vector<16x32xf32>
    %cst = arith.constant dense<0.000000e+00> : vector<16xf32>
    %8 = vector.multi_reduction <add>, %7, %cst [1] : vector<16x32xf32> to vector<16xf32>
    %9 = vector.shape_cast %8 : vector<16xf32> to vector<16x1xf32>
    %cst_7 = arith.constant 3.200000e+01 : f32
    %10 = vector.broadcast %cst_7 : f32 to vector<16x1xf32>
    %11 = arith.divf %9, %10 : vector<16x1xf32>
    %cst_8 = arith.constant 9.99999997E-7 : f32
    %12 = vector.broadcast %cst_8 : f32 to vector<16x1xf32>
    %13 = arith.addf %11, %12 : vector<16x1xf32>
    %14 = math.rsqrt %13 : vector<16x1xf32>
    %15 = vector.broadcast %14 : vector<16x1xf32> to vector<16x32xf32>
    %16 = arith.mulf %5, %15 : vector<16x32xf32>
    %17 = vector.broadcast %6 : vector<1x32xf32> to vector<16x32xf32>
    %18 = arith.mulf %16, %17 : vector<16x32xf32>
    %c0_9 = arith.constant 0 : index
    %c0_10 = arith.constant 0 : index
    %19 = vector.load %arg5[%c0_9, %c0_10] : memref<32x96xf32, #tpu.memory_space<vmem>>, vector<32x96xf32>
    %cst_11 = arith.constant dense<0.000000e+00> : vector<16x96xf32>
    %20 = tpu.matmul %18, %19, %cst_11 {dimension_numbers = #tpu.dot_dimension_numbers<[1], [0], [0], [1], [0, 0, 1, 1], [], []>} : vector<16x32xf32>, vector<32x96xf32>, vector<16x96xf32> -> vector<16x96xf32>
    %21 = vector.shape_cast %20 : vector<16x96xf32> to vector<2x8x96xf32>
    %22 = vector.extract_strided_slice %21 {offsets = [0, 0, 0], sizes = [2, 8, 32], strides = [1, 1, 1]} : vector<2x8x96xf32> to vector<2x8x32xf32>
    %23 = vector.extract_strided_slice %21 {offsets = [0, 0, 32], sizes = [2, 8, 32], strides = [1, 1, 1]} : vector<2x8x96xf32> to vector<2x8x32xf32>
    %24 = vector.extract_strided_slice %21 {offsets = [0, 0, 64], sizes = [2, 8, 32], strides = [1, 1, 1]} : vector<2x8x96xf32> to vector<2x8x32xf32>
    %c0_12 = arith.constant 0 : index
    %c0_13 = arith.constant 0 : index
    %25 = vector.load %arg6[%c0_12, %c0_13] : memref<32x32xf32, #tpu.memory_space<vmem>>, vector<32x32xf32>
    %26 = vector.extract_strided_slice %22 {offsets = [0, 0, 0], sizes = [2, 8, 16], strides = [1, 1, 1]} : vector<2x8x32xf32> to vector<2x8x16xf32>
    %27 = vector.extract_strided_slice %23 {offsets = [0, 0, 0], sizes = [2, 8, 16], strides = [1, 1, 1]} : vector<2x8x32xf32> to vector<2x8x16xf32>
    %28 = vector.extract_strided_slice %24 {offsets = [0, 0, 0], sizes = [2, 8, 16], strides = [1, 1, 1]} : vector<2x8x32xf32> to vector<2x8x16xf32>
    %cst_14 = arith.constant dense<0.000000e+00> : vector<2x8x8xf32>
    %29 = tpu.matmul %26, %27, %cst_14 {dimension_numbers = #tpu.dot_dimension_numbers<[2], [2], [1], [1], [0, 0, 0, 1, 1, 1], [0], [0]>} : vector<2x8x16xf32>, vector<2x8x16xf32>, vector<2x8x8xf32> -> vector<2x8x8xf32>
    %30 = vector.extract_strided_slice %2 {offsets = [0, 0, 0], sizes = [1, 8, 8], strides = [1, 1, 1]} : vector<2x8x8xf32> to vector<1x8x8xf32>
    %31 = vector.shape_cast %30 : vector<1x8x8xf32> to vector<8x8xf32>
    %32 = vector.shape_cast %31 : vector<8x8xf32> to vector<1x8x8xf32>
    %33 = vector.broadcast %32 : vector<1x8x8xf32> to vector<2x8x8xf32>
    %34 = arith.addf %29, %33 : vector<2x8x8xf32>
    %cst_15 = arith.constant dense<0xFF800000> : vector<2x8xf32>
    %35 = vector.multi_reduction <maximumf>, %34, %cst_15 [2] : vector<2x8x8xf32> to vector<2x8xf32>
    %36 = vector.shape_cast %35 : vector<2x8xf32> to vector<2x8x1xf32>
    %37 = vector.broadcast %36 : vector<2x8x1xf32> to vector<2x8x8xf32>
    %38 = arith.subf %34, %37 : vector<2x8x8xf32>
    %39 = math.exp %38 : vector<2x8x8xf32>
    %cst_16 = arith.constant dense<0.000000e+00> : vector<2x8xf32>
    %40 = vector.multi_reduction <add>, %39, %cst_16 [2] : vector<2x8x8xf32> to vector<2x8xf32>
    %41 = vector.shape_cast %40 : vector<2x8xf32> to vector<2x8x1xf32>
    %42 = tpu.reciprocal %41 : vector<2x8x1xf32> -> vector<2x8x1xf32>
    %43 = vector.broadcast %42 : vector<2x8x1xf32> to vector<2x8x8xf32>
    %44 = arith.mulf %39, %43 : vector<2x8x8xf32>
    %cst_17 = arith.constant dense<0.000000e+00> : vector<2x8x16xf32>
    %45 = tpu.matmul %44, %28, %cst_17 {dimension_numbers = #tpu.dot_dimension_numbers<[2], [1], [1], [2], [0, 0, 0, 1, 1, 2], [0], [0]>} : vector<2x8x8xf32>, vector<2x8x16xf32>, vector<2x8x16xf32> -> vector<2x8x16xf32>
    %46 = vector.shape_cast %45 : vector<2x8x16xf32> to vector<16x16xf32>
    %47 = vector.extract_strided_slice %25 {offsets = [0, 0], sizes = [16, 32], strides = [1, 1]} : vector<32x32xf32> to vector<16x32xf32>
    %cst_18 = arith.constant dense<0.000000e+00> : vector<16x32xf32>
    %48 = tpu.matmul %46, %47, %cst_18 {dimension_numbers = #tpu.dot_dimension_numbers<[1], [0], [0], [1], [0, 0, 1, 1], [], []>} : vector<16x16xf32>, vector<16x32xf32>, vector<16x32xf32> -> vector<16x32xf32>
    %49 = vector.extract_strided_slice %22 {offsets = [0, 0, 16], sizes = [2, 8, 16], strides = [1, 1, 1]} : vector<2x8x32xf32> to vector<2x8x16xf32>
    %50 = vector.extract_strided_slice %23 {offsets = [0, 0, 16], sizes = [2, 8, 16], strides = [1, 1, 1]} : vector<2x8x32xf32> to vector<2x8x16xf32>
    %51 = vector.extract_strided_slice %24 {offsets = [0, 0, 16], sizes = [2, 8, 16], strides = [1, 1, 1]} : vector<2x8x32xf32> to vector<2x8x16xf32>
    %cst_19 = arith.constant dense<0.000000e+00> : vector<2x8x8xf32>
    %52 = tpu.matmul %49, %50, %cst_19 {dimension_numbers = #tpu.dot_dimension_numbers<[2], [2], [1], [1], [0, 0, 0, 1, 1, 1], [0], [0]>} : vector<2x8x16xf32>, vector<2x8x16xf32>, vector<2x8x8xf32> -> vector<2x8x8xf32>
    %53 = vector.extract_strided_slice %2 {offsets = [1, 0, 0], sizes = [1, 8, 8], strides = [1, 1, 1]} : vector<2x8x8xf32> to vector<1x8x8xf32>
    %54 = vector.shape_cast %53 : vector<1x8x8xf32> to vector<8x8xf32>
    %55 = vector.shape_cast %54 : vector<8x8xf32> to vector<1x8x8xf32>
    %56 = vector.broadcast %55 : vector<1x8x8xf32> to vector<2x8x8xf32>
    %57 = arith.addf %52, %56 : vector<2x8x8xf32>
    %cst_20 = arith.constant dense<0xFF800000> : vector<2x8xf32>
    %58 = vector.multi_reduction <maximumf>, %57, %cst_20 [2] : vector<2x8x8xf32> to vector<2x8xf32>
    %59 = vector.shape_cast %58 : vector<2x8xf32> to vector<2x8x1xf32>
    %60 = vector.broadcast %59 : vector<2x8x1xf32> to vector<2x8x8xf32>
    %61 = arith.subf %57, %60 : vector<2x8x8xf32>
    %62 = math.exp %61 : vector<2x8x8xf32>
    %cst_21 = arith.constant dense<0.000000e+00> : vector<2x8xf32>
    %63 = vector.multi_reduction <add>, %62, %cst_21 [2] : vector<2x8x8xf32> to vector<2x8xf32>
    %64 = vector.shape_cast %63 : vector<2x8xf32> to vector<2x8x1xf32>
    %65 = tpu.reciprocal %64 : vector<2x8x1xf32> -> vector<2x8x1xf32>
    %66 = vector.broadcast %65 : vector<2x8x1xf32> to vector<2x8x8xf32>
    %67 = arith.mulf %62, %66 : vector<2x8x8xf32>
    %cst_22 = arith.constant dense<0.000000e+00> : vector<2x8x16xf32>
    %68 = tpu.matmul %67, %51, %cst_22 {dimension_numbers = #tpu.dot_dimension_numbers<[2], [1], [1], [2], [0, 0, 0, 1, 1, 2], [0], [0]>} : vector<2x8x8xf32>, vector<2x8x16xf32>, vector<2x8x16xf32> -> vector<2x8x16xf32>
    %69 = vector.shape_cast %68 : vector<2x8x16xf32> to vector<16x16xf32>
    %70 = vector.extract_strided_slice %25 {offsets = [16, 0], sizes = [16, 32], strides = [1, 1]} : vector<32x32xf32> to vector<16x32xf32>
    %cst_23 = arith.constant dense<0.000000e+00> : vector<16x32xf32>
    %71 = tpu.matmul %69, %70, %cst_23 {dimension_numbers = #tpu.dot_dimension_numbers<[1], [0], [0], [1], [0, 0, 1, 1], [], []>} : vector<16x16xf32>, vector<16x32xf32>, vector<16x32xf32> -> vector<16x32xf32>
    %72 = arith.addf %48, %71 : vector<16x32xf32>
    %73 = arith.addf %5, %72 : vector<16x32xf32>
    %74 = vector.extract_strided_slice %0 {offsets = [1, 0], sizes = [1, 32], strides = [1, 1]} : vector<8x32xf32> to vector<1x32xf32>
    %75 = arith.mulf %73, %73 : vector<16x32xf32>
    %cst_24 = arith.constant dense<0.000000e+00> : vector<16xf32>
    %76 = vector.multi_reduction <add>, %75, %cst_24 [1] : vector<16x32xf32> to vector<16xf32>
    %77 = vector.shape_cast %76 : vector<16xf32> to vector<16x1xf32>
    %cst_25 = arith.constant 3.200000e+01 : f32
    %78 = vector.broadcast %cst_25 : f32 to vector<16x1xf32>
    %79 = arith.divf %77, %78 : vector<16x1xf32>
    %cst_26 = arith.constant 9.99999997E-7 : f32
    %80 = vector.broadcast %cst_26 : f32 to vector<16x1xf32>
    %81 = arith.addf %79, %80 : vector<16x1xf32>
    %82 = math.rsqrt %81 : vector<16x1xf32>
    %83 = vector.broadcast %82 : vector<16x1xf32> to vector<16x32xf32>
    %84 = arith.mulf %73, %83 : vector<16x32xf32>
    %85 = vector.broadcast %74 : vector<1x32xf32> to vector<16x32xf32>
    %86 = arith.mulf %84, %85 : vector<16x32xf32>
    %c0_27 = arith.constant 0 : index
    %c0_28 = arith.constant 0 : index
    %87 = vector.load %arg7[%c0_27, %c0_28] : memref<32x64xf32, #tpu.memory_space<vmem>>, vector<32x64xf32>
    %cst_29 = arith.constant dense<0.000000e+00> : vector<16x64xf32>
    %88 = tpu.matmul %86, %87, %cst_29 {dimension_numbers = #tpu.dot_dimension_numbers<[1], [0], [0], [1], [0, 0, 1, 1], [], []>} : vector<16x32xf32>, vector<32x64xf32>, vector<16x64xf32> -> vector<16x64xf32>
    %cst_30 = arith.constant 0.000000e+00 : f32
    %89 = vector.broadcast %cst_30 : f32 to vector<16x64xf32>
    %90 = arith.maximumf %88, %89 : vector<16x64xf32>
    %c0_31 = arith.constant 0 : index
    %c0_32 = arith.constant 0 : index
    %91 = vector.load %arg8[%c0_31, %c0_32] : memref<64x32xf32, #tpu.memory_space<vmem>>, vector<64x32xf32>
    %cst_33 = arith.constant dense<0.000000e+00> : vector<16x32xf32>
    %92 = tpu.matmul %90, %91, %cst_33 {dimension_numbers = #tpu.dot_dimension_numbers<[1], [0], [0], [1], [0, 0, 1, 1], [], []>} : vector<16x64xf32>, vector<64x32xf32>, vector<16x32xf32> -> vector<16x32xf32>
    %93 = arith.addf %73, %92 : vector<16x32xf32>
    %94 = vector.extract_strided_slice %0 {offsets = [2, 0], sizes = [1, 32], strides = [1, 1]} : vector<8x32xf32> to vector<1x32xf32>
    %95 = arith.mulf %93, %93 : vector<16x32xf32>
    %cst_34 = arith.constant dense<0.000000e+00> : vector<16xf32>
    %96 = vector.multi_reduction <add>, %95, %cst_34 [1] : vector<16x32xf32> to vector<16xf32>
    %97 = vector.shape_cast %96 : vector<16xf32> to vector<16x1xf32>
    %cst_35 = arith.constant 3.200000e+01 : f32
    %98 = vector.broadcast %cst_35 : f32 to vector<16x1xf32>
    %99 = arith.divf %97, %98 : vector<16x1xf32>
    %cst_36 = arith.constant 9.99999997E-7 : f32
    %100 = vector.broadcast %cst_36 : f32 to vector<16x1xf32>
    %101 = arith.addf %99, %100 : vector<16x1xf32>
    %102 = math.rsqrt %101 : vector<16x1xf32>
    %103 = vector.broadcast %102 : vector<16x1xf32> to vector<16x32xf32>
    %104 = arith.mulf %93, %103 : vector<16x32xf32>
    %105 = vector.broadcast %94 : vector<1x32xf32> to vector<16x32xf32>
    %106 = arith.mulf %104, %105 : vector<16x32xf32>
    %c0_37 = arith.constant 0 : index
    %c0_38 = arith.constant 0 : index
    %c0_39 = arith.constant 0 : index
    %107 = vector.load %arg2[%c0_37, %c0_38, %c0_39] : memref<2x8x32xf32, #tpu.memory_space<vmem>>, vector<2x8x32xf32>
    %108 = vector.shape_cast %107 : vector<2x8x32xf32> to vector<16x32xf32>
    %109 = vector.extract_strided_slice %0 {offsets = [3, 0], sizes = [1, 32], strides = [1, 1]} : vector<8x32xf32> to vector<1x32xf32>
    %110 = arith.mulf %108, %108 : vector<16x32xf32>
    %cst_40 = arith.constant dense<0.000000e+00> : vector<16xf32>
    %111 = vector.multi_reduction <add>, %110, %cst_40 [1] : vector<16x32xf32> to vector<16xf32>
    %112 = vector.shape_cast %111 : vector<16xf32> to vector<16x1xf32>
    %cst_41 = arith.constant 3.200000e+01 : f32
    %113 = vector.broadcast %cst_41 : f32 to vector<16x1xf32>
    %114 = arith.divf %112, %113 : vector<16x1xf32>
    %cst_42 = arith.constant 9.99999997E-7 : f32
    %115 = vector.broadcast %cst_42 : f32 to vector<16x1xf32>
    %116 = arith.addf %114, %115 : vector<16x1xf32>
    %117 = math.rsqrt %116 : vector<16x1xf32>
    %118 = vector.broadcast %117 : vector<16x1xf32> to vector<16x32xf32>
    %119 = arith.mulf %108, %118 : vector<16x32xf32>
    %120 = vector.broadcast %109 : vector<1x32xf32> to vector<16x32xf32>
    %121 = arith.mulf %119, %120 : vector<16x32xf32>
    %c0_43 = arith.constant 0 : index
    %c0_44 = arith.constant 0 : index
    %122 = vector.load %arg9[%c0_43, %c0_44] : memref<32x96xf32, #tpu.memory_space<vmem>>, vector<32x96xf32>
    %cst_45 = arith.constant dense<0.000000e+00> : vector<16x96xf32>
    %123 = tpu.matmul %121, %122, %cst_45 {dimension_numbers = #tpu.dot_dimension_numbers<[1], [0], [0], [1], [0, 0, 1, 1], [], []>} : vector<16x32xf32>, vector<32x96xf32>, vector<16x96xf32> -> vector<16x96xf32>
    %124 = vector.shape_cast %123 : vector<16x96xf32> to vector<2x8x96xf32>
    %125 = vector.extract_strided_slice %124 {offsets = [0, 0, 0], sizes = [2, 8, 32], strides = [1, 1, 1]} : vector<2x8x96xf32> to vector<2x8x32xf32>
    %126 = vector.extract_strided_slice %124 {offsets = [0, 0, 32], sizes = [2, 8, 32], strides = [1, 1, 1]} : vector<2x8x96xf32> to vector<2x8x32xf32>
    %127 = vector.extract_strided_slice %124 {offsets = [0, 0, 64], sizes = [2, 8, 32], strides = [1, 1, 1]} : vector<2x8x96xf32> to vector<2x8x32xf32>
    %c0_46 = arith.constant 0 : index
    %c0_47 = arith.constant 0 : index
    %128 = vector.load %arg10[%c0_46, %c0_47] : memref<32x32xf32, #tpu.memory_space<vmem>>, vector<32x32xf32>
    %129 = vector.extract_strided_slice %125 {offsets = [0, 0, 0], sizes = [2, 8, 16], strides = [1, 1, 1]} : vector<2x8x32xf32> to vector<2x8x16xf32>
    %130 = vector.extract_strided_slice %126 {offsets = [0, 0, 0], sizes = [2, 8, 16], strides = [1, 1, 1]} : vector<2x8x32xf32> to vector<2x8x16xf32>
    %131 = vector.extract_strided_slice %127 {offsets = [0, 0, 0], sizes = [2, 8, 16], strides = [1, 1, 1]} : vector<2x8x32xf32> to vector<2x8x16xf32>
    %cst_48 = arith.constant dense<0.000000e+00> : vector<2x8x8xf32>
    %132 = tpu.matmul %129, %130, %cst_48 {dimension_numbers = #tpu.dot_dimension_numbers<[2], [2], [1], [1], [0, 0, 0, 1, 1, 1], [0], [0]>} : vector<2x8x16xf32>, vector<2x8x16xf32>, vector<2x8x8xf32> -> vector<2x8x8xf32>
    %133 = vector.extract_strided_slice %3 {offsets = [0, 0, 0], sizes = [1, 8, 8], strides = [1, 1, 1]} : vector<2x8x8xf32> to vector<1x8x8xf32>
    %134 = vector.shape_cast %133 : vector<1x8x8xf32> to vector<8x8xf32>
    %135 = vector.shape_cast %134 : vector<8x8xf32> to vector<1x8x8xf32>
    %136 = vector.broadcast %135 : vector<1x8x8xf32> to vector<2x8x8xf32>
    %137 = arith.addf %132, %136 : vector<2x8x8xf32>
    %cst_49 = arith.constant dense<0xFF800000> : vector<2x8xf32>
    %138 = vector.multi_reduction <maximumf>, %137, %cst_49 [2] : vector<2x8x8xf32> to vector<2x8xf32>
    %139 = vector.shape_cast %138 : vector<2x8xf32> to vector<2x8x1xf32>
    %140 = vector.broadcast %139 : vector<2x8x1xf32> to vector<2x8x8xf32>
    %141 = arith.subf %137, %140 : vector<2x8x8xf32>
    %142 = math.exp %141 : vector<2x8x8xf32>
    %cst_50 = arith.constant dense<0.000000e+00> : vector<2x8xf32>
    %143 = vector.multi_reduction <add>, %142, %cst_50 [2] : vector<2x8x8xf32> to vector<2x8xf32>
    %144 = vector.shape_cast %143 : vector<2x8xf32> to vector<2x8x1xf32>
    %145 = tpu.reciprocal %144 : vector<2x8x1xf32> -> vector<2x8x1xf32>
    %146 = vector.broadcast %145 : vector<2x8x1xf32> to vector<2x8x8xf32>
    %147 = arith.mulf %142, %146 : vector<2x8x8xf32>
    %cst_51 = arith.constant dense<0.000000e+00> : vector<2x8x16xf32>
    %148 = tpu.matmul %147, %131, %cst_51 {dimension_numbers = #tpu.dot_dimension_numbers<[2], [1], [1], [2], [0, 0, 0, 1, 1, 2], [0], [0]>} : vector<2x8x8xf32>, vector<2x8x16xf32>, vector<2x8x16xf32> -> vector<2x8x16xf32>
    %149 = vector.shape_cast %148 : vector<2x8x16xf32> to vector<16x16xf32>
    %150 = vector.extract_strided_slice %128 {offsets = [0, 0], sizes = [16, 32], strides = [1, 1]} : vector<32x32xf32> to vector<16x32xf32>
    %cst_52 = arith.constant dense<0.000000e+00> : vector<16x32xf32>
    %151 = tpu.matmul %149, %150, %cst_52 {dimension_numbers = #tpu.dot_dimension_numbers<[1], [0], [0], [1], [0, 0, 1, 1], [], []>} : vector<16x16xf32>, vector<16x32xf32>, vector<16x32xf32> -> vector<16x32xf32>
    %152 = vector.extract_strided_slice %125 {offsets = [0, 0, 16], sizes = [2, 8, 16], strides = [1, 1, 1]} : vector<2x8x32xf32> to vector<2x8x16xf32>
    %153 = vector.extract_strided_slice %126 {offsets = [0, 0, 16], sizes = [2, 8, 16], strides = [1, 1, 1]} : vector<2x8x32xf32> to vector<2x8x16xf32>
    %154 = vector.extract_strided_slice %127 {offsets = [0, 0, 16], sizes = [2, 8, 16], strides = [1, 1, 1]} : vector<2x8x32xf32> to vector<2x8x16xf32>
    %cst_53 = arith.constant dense<0.000000e+00> : vector<2x8x8xf32>
    %155 = tpu.matmul %152, %153, %cst_53 {dimension_numbers = #tpu.dot_dimension_numbers<[2], [2], [1], [1], [0, 0, 0, 1, 1, 1], [0], [0]>} : vector<2x8x16xf32>, vector<2x8x16xf32>, vector<2x8x8xf32> -> vector<2x8x8xf32>
    %156 = vector.extract_strided_slice %3 {offsets = [1, 0, 0], sizes = [1, 8, 8], strides = [1, 1, 1]} : vector<2x8x8xf32> to vector<1x8x8xf32>
    %157 = vector.shape_cast %156 : vector<1x8x8xf32> to vector<8x8xf32>
    %158 = vector.shape_cast %157 : vector<8x8xf32> to vector<1x8x8xf32>
    %159 = vector.broadcast %158 : vector<1x8x8xf32> to vector<2x8x8xf32>
    %160 = arith.addf %155, %159 : vector<2x8x8xf32>
    %cst_54 = arith.constant dense<0xFF800000> : vector<2x8xf32>
    %161 = vector.multi_reduction <maximumf>, %160, %cst_54 [2] : vector<2x8x8xf32> to vector<2x8xf32>
    %162 = vector.shape_cast %161 : vector<2x8xf32> to vector<2x8x1xf32>
    %163 = vector.broadcast %162 : vector<2x8x1xf32> to vector<2x8x8xf32>
    %164 = arith.subf %160, %163 : vector<2x8x8xf32>
    %165 = math.exp %164 : vector<2x8x8xf32>
    %cst_55 = arith.constant dense<0.000000e+00> : vector<2x8xf32>
    %166 = vector.multi_reduction <add>, %165, %cst_55 [2] : vector<2x8x8xf32> to vector<2x8xf32>
    %167 = vector.shape_cast %166 : vector<2x8xf32> to vector<2x8x1xf32>
    %168 = tpu.reciprocal %167 : vector<2x8x1xf32> -> vector<2x8x1xf32>
    %169 = vector.broadcast %168 : vector<2x8x1xf32> to vector<2x8x8xf32>
    %170 = arith.mulf %165, %169 : vector<2x8x8xf32>
    %cst_56 = arith.constant dense<0.000000e+00> : vector<2x8x16xf32>
    %171 = tpu.matmul %170, %154, %cst_56 {dimension_numbers = #tpu.dot_dimension_numbers<[2], [1], [1], [2], [0, 0, 0, 1, 1, 2], [0], [0]>} : vector<2x8x8xf32>, vector<2x8x16xf32>, vector<2x8x16xf32> -> vector<2x8x16xf32>
    %172 = vector.shape_cast %171 : vector<2x8x16xf32> to vector<16x16xf32>
    %173 = vector.extract_strided_slice %128 {offsets = [16, 0], sizes = [16, 32], strides = [1, 1]} : vector<32x32xf32> to vector<16x32xf32>
    %cst_57 = arith.constant dense<0.000000e+00> : vector<16x32xf32>
    %174 = tpu.matmul %172, %173, %cst_57 {dimension_numbers = #tpu.dot_dimension_numbers<[1], [0], [0], [1], [0, 0, 1, 1], [], []>} : vector<16x16xf32>, vector<16x32xf32>, vector<16x32xf32> -> vector<16x32xf32>
    %175 = arith.addf %151, %174 : vector<16x32xf32>
    %176 = arith.addf %108, %175 : vector<16x32xf32>
    %177 = vector.extract_strided_slice %0 {offsets = [4, 0], sizes = [1, 32], strides = [1, 1]} : vector<8x32xf32> to vector<1x32xf32>
    %178 = arith.mulf %176, %176 : vector<16x32xf32>
    %cst_58 = arith.constant dense<0.000000e+00> : vector<16xf32>
    %179 = vector.multi_reduction <add>, %178, %cst_58 [1] : vector<16x32xf32> to vector<16xf32>
    %180 = vector.shape_cast %179 : vector<16xf32> to vector<16x1xf32>
    %cst_59 = arith.constant 3.200000e+01 : f32
    %181 = vector.broadcast %cst_59 : f32 to vector<16x1xf32>
    %182 = arith.divf %180, %181 : vector<16x1xf32>
    %cst_60 = arith.constant 9.99999997E-7 : f32
    %183 = vector.broadcast %cst_60 : f32 to vector<16x1xf32>
    %184 = arith.addf %182, %183 : vector<16x1xf32>
    %185 = math.rsqrt %184 : vector<16x1xf32>
    %186 = vector.broadcast %185 : vector<16x1xf32> to vector<16x32xf32>
    %187 = arith.mulf %176, %186 : vector<16x32xf32>
    %188 = vector.broadcast %177 : vector<1x32xf32> to vector<16x32xf32>
    %189 = arith.mulf %187, %188 : vector<16x32xf32>
    %c0_61 = arith.constant 0 : index
    %c0_62 = arith.constant 0 : index
    %190 = vector.load %arg11[%c0_61, %c0_62] : memref<32x32xf32, #tpu.memory_space<vmem>>, vector<32x32xf32>
    %cst_63 = arith.constant dense<0.000000e+00> : vector<16x32xf32>
    %191 = tpu.matmul %189, %190, %cst_63 {dimension_numbers = #tpu.dot_dimension_numbers<[1], [0], [0], [1], [0, 0, 1, 1], [], []>} : vector<16x32xf32>, vector<32x32xf32>, vector<16x32xf32> -> vector<16x32xf32>
    %192 = vector.shape_cast %191 : vector<16x32xf32> to vector<2x8x32xf32>
    %c0_64 = arith.constant 0 : index
    %c0_65 = arith.constant 0 : index
    %193 = vector.load %arg12[%c0_64, %c0_65] : memref<32x64xf32, #tpu.memory_space<vmem>>, vector<32x64xf32>
    %cst_66 = arith.constant dense<0.000000e+00> : vector<16x64xf32>
    %194 = tpu.matmul %106, %193, %cst_66 {dimension_numbers = #tpu.dot_dimension_numbers<[1], [0], [0], [1], [0, 0, 1, 1], [], []>} : vector<16x32xf32>, vector<32x64xf32>, vector<16x64xf32> -> vector<16x64xf32>
    %195 = vector.shape_cast %194 : vector<16x64xf32> to vector<2x8x64xf32>
    %196 = vector.extract_strided_slice %195 {offsets = [0, 0, 0], sizes = [2, 8, 32], strides = [1, 1, 1]} : vector<2x8x64xf32> to vector<2x8x32xf32>
    %197 = vector.extract_strided_slice %195 {offsets = [0, 0, 32], sizes = [2, 8, 32], strides = [1, 1, 1]} : vector<2x8x64xf32> to vector<2x8x32xf32>
    %c0_67 = arith.constant 0 : index
    %c0_68 = arith.constant 0 : index
    %198 = vector.load %arg13[%c0_67, %c0_68] : memref<32x32xf32, #tpu.memory_space<vmem>>, vector<32x32xf32>
    %199 = vector.extract_strided_slice %192 {offsets = [0, 0, 0], sizes = [2, 8, 16], strides = [1, 1, 1]} : vector<2x8x32xf32> to vector<2x8x16xf32>
    %200 = vector.extract_strided_slice %196 {offsets = [0, 0, 0], sizes = [2, 8, 16], strides = [1, 1, 1]} : vector<2x8x32xf32> to vector<2x8x16xf32>
    %201 = vector.extract_strided_slice %197 {offsets = [0, 0, 0], sizes = [2, 8, 16], strides = [1, 1, 1]} : vector<2x8x32xf32> to vector<2x8x16xf32>
    %cst_69 = arith.constant dense<0.000000e+00> : vector<2x8x8xf32>
    %202 = tpu.matmul %199, %200, %cst_69 {dimension_numbers = #tpu.dot_dimension_numbers<[2], [2], [1], [1], [0, 0, 0, 1, 1, 1], [0], [0]>} : vector<2x8x16xf32>, vector<2x8x16xf32>, vector<2x8x8xf32> -> vector<2x8x8xf32>
    %cst_70 = arith.constant dense<0xFF800000> : vector<2x8xf32>
    %203 = vector.multi_reduction <maximumf>, %202, %cst_70 [2] : vector<2x8x8xf32> to vector<2x8xf32>
    %204 = vector.shape_cast %203 : vector<2x8xf32> to vector<2x8x1xf32>
    %205 = vector.broadcast %204 : vector<2x8x1xf32> to vector<2x8x8xf32>
    %206 = arith.subf %202, %205 : vector<2x8x8xf32>
    %207 = math.exp %206 : vector<2x8x8xf32>
    %cst_71 = arith.constant dense<0.000000e+00> : vector<2x8xf32>
    %208 = vector.multi_reduction <add>, %207, %cst_71 [2] : vector<2x8x8xf32> to vector<2x8xf32>
    %209 = vector.shape_cast %208 : vector<2x8xf32> to vector<2x8x1xf32>
    %210 = tpu.reciprocal %209 : vector<2x8x1xf32> -> vector<2x8x1xf32>
    %211 = vector.broadcast %210 : vector<2x8x1xf32> to vector<2x8x8xf32>
    %212 = arith.mulf %207, %211 : vector<2x8x8xf32>
    %cst_72 = arith.constant dense<0.000000e+00> : vector<2x8x16xf32>
    %213 = tpu.matmul %212, %201, %cst_72 {dimension_numbers = #tpu.dot_dimension_numbers<[2], [1], [1], [2], [0, 0, 0, 1, 1, 2], [0], [0]>} : vector<2x8x8xf32>, vector<2x8x16xf32>, vector<2x8x16xf32> -> vector<2x8x16xf32>
    %214 = vector.shape_cast %213 : vector<2x8x16xf32> to vector<16x16xf32>
    %215 = vector.extract_strided_slice %198 {offsets = [0, 0], sizes = [16, 32], strides = [1, 1]} : vector<32x32xf32> to vector<16x32xf32>
    %cst_73 = arith.constant dense<0.000000e+00> : vector<16x32xf32>
    %216 = tpu.matmul %214, %215, %cst_73 {dimension_numbers = #tpu.dot_dimension_numbers<[1], [0], [0], [1], [0, 0, 1, 1], [], []>} : vector<16x16xf32>, vector<16x32xf32>, vector<16x32xf32> -> vector<16x32xf32>
    %217 = vector.extract_strided_slice %192 {offsets = [0, 0, 16], sizes = [2, 8, 16], strides = [1, 1, 1]} : vector<2x8x32xf32> to vector<2x8x16xf32>
    %218 = vector.extract_strided_slice %196 {offsets = [0, 0, 16], sizes = [2, 8, 16], strides = [1, 1, 1]} : vector<2x8x32xf32> to vector<2x8x16xf32>
    %219 = vector.extract_strided_slice %197 {offsets = [0, 0, 16], sizes = [2, 8, 16], strides = [1, 1, 1]} : vector<2x8x32xf32> to vector<2x8x16xf32>
    %cst_74 = arith.constant dense<0.000000e+00> : vector<2x8x8xf32>
    %220 = tpu.matmul %217, %218, %cst_74 {dimension_numbers = #tpu.dot_dimension_numbers<[2], [2], [1], [1], [0, 0, 0, 1, 1, 1], [0], [0]>} : vector<2x8x16xf32>, vector<2x8x16xf32>, vector<2x8x8xf32> -> vector<2x8x8xf32>
    %cst_75 = arith.constant dense<0xFF800000> : vector<2x8xf32>
    %221 = vector.multi_reduction <maximumf>, %220, %cst_75 [2] : vector<2x8x8xf32> to vector<2x8xf32>
    %222 = vector.shape_cast %221 : vector<2x8xf32> to vector<2x8x1xf32>
    %223 = vector.broadcast %222 : vector<2x8x1xf32> to vector<2x8x8xf32>
    %224 = arith.subf %220, %223 : vector<2x8x8xf32>
    %225 = math.exp %224 : vector<2x8x8xf32>
    %cst_76 = arith.constant dense<0.000000e+00> : vector<2x8xf32>
    %226 = vector.multi_reduction <add>, %225, %cst_76 [2] : vector<2x8x8xf32> to vector<2x8xf32>
    %227 = vector.shape_cast %226 : vector<2x8xf32> to vector<2x8x1xf32>
    %228 = tpu.reciprocal %227 : vector<2x8x1xf32> -> vector<2x8x1xf32>
    %229 = vector.broadcast %228 : vector<2x8x1xf32> to vector<2x8x8xf32>
    %230 = arith.mulf %225, %229 : vector<2x8x8xf32>
    %cst_77 = arith.constant dense<0.000000e+00> : vector<2x8x16xf32>
    %231 = tpu.matmul %230, %219, %cst_77 {dimension_numbers = #tpu.dot_dimension_numbers<[2], [1], [1], [2], [0, 0, 0, 1, 1, 2], [0], [0]>} : vector<2x8x8xf32>, vector<2x8x16xf32>, vector<2x8x16xf32> -> vector<2x8x16xf32>
    %232 = vector.shape_cast %231 : vector<2x8x16xf32> to vector<16x16xf32>
    %233 = vector.extract_strided_slice %198 {offsets = [16, 0], sizes = [16, 32], strides = [1, 1]} : vector<32x32xf32> to vector<16x32xf32>
    %cst_78 = arith.constant dense<0.000000e+00> : vector<16x32xf32>
    %234 = tpu.matmul %232, %233, %cst_78 {dimension_numbers = #tpu.dot_dimension_numbers<[1], [0], [0], [1], [0, 0, 1, 1], [], []>} : vector<16x16xf32>, vector<16x32xf32>, vector<16x32xf32> -> vector<16x32xf32>
    %235 = arith.addf %216, %234 : vector<16x32xf32>
    %236 = arith.addf %176, %235 : vector<16x32xf32>
    %237 = vector.extract_strided_slice %0 {offsets = [5, 0], sizes = [1, 32], strides = [1, 1]} : vector<8x32xf32> to vector<1x32xf32>
    %238 = arith.mulf %236, %236 : vector<16x32xf32>
    %cst_79 = arith.constant dense<0.000000e+00> : vector<16xf32>
    %239 = vector.multi_reduction <add>, %238, %cst_79 [1] : vector<16x32xf32> to vector<16xf32>
    %240 = vector.shape_cast %239 : vector<16xf32> to vector<16x1xf32>
    %cst_80 = arith.constant 3.200000e+01 : f32
    %241 = vector.broadcast %cst_80 : f32 to vector<16x1xf32>
    %242 = arith.divf %240, %241 : vector<16x1xf32>
    %cst_81 = arith.constant 9.99999997E-7 : f32
    %243 = vector.broadcast %cst_81 : f32 to vector<16x1xf32>
    %244 = arith.addf %242, %243 : vector<16x1xf32>
    %245 = math.rsqrt %244 : vector<16x1xf32>
    %246 = vector.broadcast %245 : vector<16x1xf32> to vector<16x32xf32>
    %247 = arith.mulf %236, %246 : vector<16x32xf32>
    %248 = vector.broadcast %237 : vector<1x32xf32> to vector<16x32xf32>
    %249 = arith.mulf %247, %248 : vector<16x32xf32>
    %c0_82 = arith.constant 0 : index
    %c0_83 = arith.constant 0 : index
    %250 = vector.load %arg14[%c0_82, %c0_83] : memref<32x64xf32, #tpu.memory_space<vmem>>, vector<32x64xf32>
    %cst_84 = arith.constant dense<0.000000e+00> : vector<16x64xf32>
    %251 = tpu.matmul %249, %250, %cst_84 {dimension_numbers = #tpu.dot_dimension_numbers<[1], [0], [0], [1], [0, 0, 1, 1], [], []>} : vector<16x32xf32>, vector<32x64xf32>, vector<16x64xf32> -> vector<16x64xf32>
    %cst_85 = arith.constant 0.000000e+00 : f32
    %252 = vector.broadcast %cst_85 : f32 to vector<16x64xf32>
    %253 = arith.maximumf %251, %252 : vector<16x64xf32>
    %c0_86 = arith.constant 0 : index
    %c0_87 = arith.constant 0 : index
    %254 = vector.load %arg15[%c0_86, %c0_87] : memref<64x32xf32, #tpu.memory_space<vmem>>, vector<64x32xf32>
    %cst_88 = arith.constant dense<0.000000e+00> : vector<16x32xf32>
    %255 = tpu.matmul %253, %254, %cst_88 {dimension_numbers = #tpu.dot_dimension_numbers<[1], [0], [0], [1], [0, 0, 1, 1], [], []>} : vector<16x64xf32>, vector<64x32xf32>, vector<16x32xf32> -> vector<16x32xf32>
    %256 = arith.addf %236, %255 : vector<16x32xf32>
    %257 = vector.extract_strided_slice %0 {offsets = [6, 0], sizes = [1, 32], strides = [1, 1]} : vector<8x32xf32> to vector<1x32xf32>
    %258 = arith.mulf %256, %256 : vector<16x32xf32>
    %cst_89 = arith.constant dense<0.000000e+00> : vector<16xf32>
    %259 = vector.multi_reduction <add>, %258, %cst_89 [1] : vector<16x32xf32> to vector<16xf32>
    %260 = vector.shape_cast %259 : vector<16xf32> to vector<16x1xf32>
    %cst_90 = arith.constant 3.200000e+01 : f32
    %261 = vector.broadcast %cst_90 : f32 to vector<16x1xf32>
    %262 = arith.divf %260, %261 : vector<16x1xf32>
    %cst_91 = arith.constant 9.99999997E-7 : f32
    %263 = vector.broadcast %cst_91 : f32 to vector<16x1xf32>
    %264 = arith.addf %262, %263 : vector<16x1xf32>
    %265 = math.rsqrt %264 : vector<16x1xf32>
    %266 = vector.broadcast %265 : vector<16x1xf32> to vector<16x32xf32>
    %267 = arith.mulf %256, %266 : vector<16x32xf32>
    %268 = vector.broadcast %257 : vector<1x32xf32> to vector<16x32xf32>
    %269 = arith.mulf %267, %268 : vector<16x32xf32>
    %cst_92 = arith.constant 0.176776692 : f32
    %270 = vector.broadcast %cst_92 : f32 to vector<16x32xf32>
    %271 = arith.mulf %269, %270 : vector<16x32xf32>
    %c0_93 = arith.constant 0 : index
    %c0_94 = arith.constant 0 : index
    %272 = vector.load %arg16[%c0_93, %c0_94] : memref<32x128xf32, #tpu.memory_space<vmem>>, vector<32x128xf32>
    %cst_95 = arith.constant dense<0.000000e+00> : vector<16x128xf32>
    %273 = tpu.matmul %271, %272, %cst_95 {dimension_numbers = #tpu.dot_dimension_numbers<[1], [0], [0], [1], [0, 0, 1, 1], [], []>} : vector<16x32xf32>, vector<32x128xf32>, vector<16x128xf32> -> vector<16x128xf32>
    %274 = vector.shape_cast %273 : vector<16x128xf32> to vector<2x8x128xf32>
    %c0_96 = arith.constant 0 : index
    %c0_97 = arith.constant 0 : index
    %c0_98 = arith.constant 0 : index
    %275 = vector.load %arg17[%c0_96, %c0_97, %c0_98] : memref<2x8x128xf32, #tpu.memory_space<vmem>>, vector<2x8x128xf32>
    tpu.vector_store %arg17[%c0_96, %c0_97, %c0_98], %274 {strides = array<i32>} : memref<2x8x128xf32, #tpu.memory_space<vmem>>, vector<2x8x128xf32>,
    return
  }
  func.func @transform_0(%arg0: i32) -> (i32, i32, i32) {
    %c0_i32 = arith.constant 0 : i32
    %c0_i32_0 = arith.constant 0 : i32
    %c0_i32_1 = arith.constant 0 : i32
    return %arg0, %c0_i32, %c0_i32_0 : i32, i32, i32
  }
  func.func @transform_1(%arg0: i32) -> (i32, i32, i32) {
    %c0_i32 = arith.constant 0 : i32
    %c0_i32_0 = arith.constant 0 : i32
    %c0_i32_1 = arith.constant 0 : i32
    return %arg0, %c0_i32, %c0_i32_0 : i32, i32, i32
  }
  func.func @transform_2(%arg0: i32) -> (i32, i32, i32) {
    %c0_i32 = arith.constant 0 : i32
    %c0_i32_0 = arith.constant 0 : i32
    %c0_i32_1 = arith.constant 0 : i32
    %c0_i32_2 = arith.constant 0 : i32
    return %c0_i32, %c0_i32_0, %c0_i32_1 : i32, i32, i32
  }
  func.func @transform_3(%arg0: i32) -> (i32, i32) {
    %c0_i32 = arith.constant 0 : i32
    %c0_i32_0 = arith.constant 0 : i32
    %c0_i32_1 = arith.constant 0 : i32
    return %c0_i32, %c0_i32_0 : i32, i32
  }
  func.func @transform_4(%arg0: i32) -> (i32, i32) {
    %c0_i32 = arith.constant 0 : i32
    %c0_i32_0 = arith.constant 0 : i32
    %c0_i32_1 = arith.constant 0 : i32
    return %c0_i32, %c0_i32_0 : i32, i32
  }
  func.func @transform_5(%arg0: i32) -> (i32, i32) {
    %c0_i32 = arith.constant 0 : i32
    %c0_i32_0 = arith.constant 0 : i32
    %c0_i32_1 = arith.constant 0 : i32
    return %c0_i32, %c0_i32_0 : i32, i32
  }
  func.func @transform_6(%arg0: i32) -> (i32, i32) {
    %c0_i32 = arith.constant 0 : i32
    %c0_i32_0 = arith.constant 0 : i32
    %c0_i32_1 = arith.constant 0 : i32
    return %c0_i32, %c0_i32_0 : i32, i32
  }
  func.func @transform_7(%arg0: i32) -> (i32, i32) {
    %c0_i32 = arith.constant 0 : i32
    %c0_i32_0 = arith.constant 0 : i32
    %c0_i32_1 = arith.constant 0 : i32
    return %c0_i32, %c0_i32_0 : i32, i32
  }
  func.func @transform_8(%arg0: i32) -> (i32, i32) {
    %c0_i32 = arith.constant 0 : i32
    %c0_i32_0 = arith.constant 0 : i32
    %c0_i32_1 = arith.constant 0 : i32
    return %c0_i32, %c0_i32_0 : i32, i32
  }
  func.func @transform_9(%arg0: i32) -> (i32, i32) {
    %c0_i32 = arith.constant 0 : i32
    %c0_i32_0 = arith.constant 0 : i32
    %c0_i32_1 = arith.constant 0 : i32
    return %c0_i32, %c0_i32_0 : i32, i32
  }
  func.func @transform_10(%arg0: i32) -> (i32, i32) {
    %c0_i32 = arith.constant 0 : i32
    %c0_i32_0 = arith.constant 0 : i32
    %c0_i32_1 = arith.constant 0 : i32
    return %c0_i32, %c0_i32_0 : i32, i32
  }
  func.func @transform_11(%arg0: i32) -> (i32, i32) {
    %c0_i32 = arith.constant 0 : i32
    %c0_i32_0 = arith.constant 0 : i32
    %c0_i32_1 = arith.constant 0 : i32
    return %c0_i32, %c0_i32_0 : i32, i32
  }
  func.func @transform_12(%arg0: i32) -> (i32, i32) {
    %c0_i32 = arith.constant 0 : i32
    %c0_i32_0 = arith.constant 0 : i32
    %c0_i32_1 = arith.constant 0 : i32
    return %c0_i32, %c0_i32_0 : i32, i32
  }
  func.func @transform_13(%arg0: i32) -> (i32, i32) {
    %c0_i32 = arith.constant 0 : i32
    %c0_i32_0 = arith.constant 0 : i32
    %c0_i32_1 = arith.constant 0 : i32
    return %c0_i32, %c0_i32_0 : i32, i32
  }
  func.func @transform_14(%arg0: i32) -> (i32, i32) {
    %c0_i32 = arith.constant 0 : i32
    %c0_i32_0 = arith.constant 0 : i32
    %c0_i32_1 = arith.constant 0 : i32
    return %c0_i32, %c0_i32_0 : i32, i32
  }
  func.func @transform_15(%arg0: i32) -> (i32, i32) {
    %c0_i32 = arith.constant 0 : i32
    %c0_i32_0 = arith.constant 0 : i32
    %c0_i32_1 = arith.constant 0 : i32
    return %c0_i32, %c0_i32_0 : i32, i32
  }
  func.func @transform_16(%arg0: i32) -> (i32, i32, i32) {
    %c0_i32 = arith.constant 0 : i32
    %c0_i32_0 = arith.constant 0 : i32
    %c0_i32_1 = arith.constant 0 : i32
    return %arg0, %c0_i32, %c0_i32_0 : i32, i32, i32
  }
}

</mosaic_0001>

<bundles_post_ra>
// kernel: qa_classifier_forward.1
= control target key start
LH: loop header
LB: loop body
LE: loop exit
PB: predicated region body
PF: predicated region fallthrough
CT: control target
= control target key end

     0   :  { %s2646_s0 = inlined_call_operand.vmem [shape: f32[2,8,32], index: 0, kind: input, shape index: {}]   ;;  %s2647_s1 = inlined_call_operand.vmem [shape: f32[2,8,32], index: 1, kind: input, shape index: {}]   ;;  %s2648_s2 = inlined_call_operand.vmem [shape: f32[4,8,8], index: 2, kind: input, shape index: {}]   ;;  %s2649_s3 = inlined_call_operand.vmem [shape: f32[8,32], index: 3, kind: input, shape index: {}]   ;;  %s2650_s4 = inlined_call_operand.vmem [shape: f32[32,96], index: 4, kind: input, shape index: {}]   ;;  %s2651_s5 = inlined_call_operand.vmem [shape: f32[32,32], index: 5, kind: input, shape index: {}]   ;;  %s2652_s6 = inlined_call_operand.vmem [shape: f32[32,64], index: 6, kind: input, shape index: {}]   ;;  %s2653_s7 = inlined_call_operand.vmem [shape: f32[64,32], index: 7, kind: input, shape index: {}]   ;;  %s2654_s8 = inlined_call_operand.vmem [shape: f32[32,96], index: 8, kind: input, shape index: {}]   ;;  %s2655_s9 = inlined_call_operand.vmem [shape: f32[32,32], index: 9, kind: input, shape index: {}]   ;;  %s2656_s10 = inlined_call_operand.vmem [shape: f32[32,32], index: 10, kind: input, shape index: {}]   ;;  %s2657_s11 = inlined_call_operand.vmem [shape: f32[32,64], index: 11, kind: input, shape index: {}]   ;;  %s2658_s12 = inlined_call_operand.vmem [shape: f32[32,32], index: 12, kind: input, shape index: {}]   ;;  %s2659_s13 = inlined_call_operand.vmem [shape: f32[32,64], index: 13, kind: input, shape index: {}]   ;;  %s2660_s14 = inlined_call_operand.vmem [shape: f32[64,32], index: 14, kind: input, shape index: {}]   ;;  %s2661_s15 = inlined_call_operand.vmem [shape: f32[32,128], index: 15, kind: input, shape index: {}]   ;;  %s2662_s16 = inlined_call_operand.hbm [shape: f32[2,8,128], index: 16, kind: output, shape index: {}]  }
   0x1   :  { %2664 = sst [smem:[#allocation5_spill]] %s2646_s0 }
   0x2   :  { %s2665_s23 = sld [smem:[#allocation5_spill]]  ;;  %vm63_vm0 = vcmask 261120  }
   0x8   :  { %v2085_v0 = vld [vmem:[%s2665_s23] sm:$0xff] }
   0x9   :  { %21 = vsyncpa [#allocation3], 0  ;;  %v61_v1 = vmul.f32 %v2085_v0, %v2085_v0  ;;  %v2092_v2 = vld [vmem:[%s2665_s23 + $0x8] sm:$0xff]  ;;  %v1988_v6 = vmov 32.0   ;;  %v109_v10 = vld [vmem:[%s2650_s4 + $0x18] sm:$0xff]  ;;  %s1989_s20 = smov 80  }
   0xa   :  { %v62_v4 = vmul.f32 %v2092_v2, %v2092_v2  ;;  %1883 = vrcp.f32 %v1988_v6  ;;  %128 = vmatpush.msra.mxu0 %v109_v10  ;;  %v108_v11 = vld [vmem:[%s2650_s4 + $0x10] sm:$0xff]  ;;  %v107_v13 = vld [vmem:[%s2650_s4 + $0x8] sm:$0xff]  ;;  %v106_v14 = vld [vmem:[%s2650_s4] sm:$0xff]  ;;  %s1990_s21 = smov 96   ;;  %s1991_s22 = smov 112   ;;  %vm146_vm8 = vcmask 130048  }
   0xb   :  { %v64_v3 = vsel %vm63_vm0, %v61_v1, 0.0  ;;  %v2117_v28 = vld [vmem:[%s2649_s3] sm:$0xff]  ;;  %v56_v51 = vld [vmem:[%s2648_s2 + $0x8] sm:$0xff]  ;;  %vm198_vm9 = vcmask 64512   ;;  %s1992_s27 = smov 64   ;;  %s1993_s28 = smov 48  }
   0xc   :  { %65 = vadd.xlane.f32.xlu0 %v64_v3  ;;  %v67_v5 = vsel %vm63_vm0, %v62_v4, 0.0  ;;  %129 = vmatpush.msra.mxu0 %v108_v11  ;;  %v103_v32 = vperm.slane %v2117_v28, 0  ;;  %v55_v55 = vld [vmem:[%s2648_s2] sm:$0xff]  ;;  %s1776_s29 = sshll.u32 %s2662_s16, 4  ;;  %s1777_s29 = int_to_ptr.hbm [resolvable:$true] %s1776_s29 }
   0xe   :  { %130 = vmatpush.msra.mxu0 %v107_v13 }
  0x10   :  { %v1884_v7 = vpop.eup %1883  ;;  %131 = vmatpush.msra.mxu0 %v106_v14 }
  0x11   :  { %v71_v8 = vmul.f32 32.0, %v1884_v7  ;;  %vm75_vm1 = vweird.f32 %v1884_v7 }
  0x13   :  { %v72_v9 = vsub.f32 1.0, %v71_v8 }
  0x14   :  { %68 = vadd.xlane.f32.xlu0 %v67_v5 }
  0x15   :  { %v73_v12 = vmul.f32 %v1884_v7, %v72_v9 }
  0x17   :  { %v74_v15 = vadd.f32 %v1884_v7, %v73_v12 }
  0x19   :  { %v2110_v16 = vsel %vm75_vm1, %v1884_v7, %v74_v15 }
  0x7f   :  { %v66_v17 = vpop.xlane.xlu0 %65 }
  0x80   :  { %v77_v18 = vmul.f32 %v2110_v16, %v66_v17 }
  0x82   :  { %v79_v19 = vadd.f32 1e-06, %v77_v18 }
  0x84   :  { %1885 = vrsqrt.f32 %v79_v19  ;;  %vm87_vm3 = vweird.f32 %v79_v19 }
  0x87   :  { %v69_v20 = vpop.xlane.xlu0 %68 }
  0x88   :  { %v78_v21 = vmul.f32 %v2110_v16, %v69_v20 }
  0x8a   :  { %v1886_v22 = vpop.eup %1885  ;;  %v80_v23 = vadd.f32 1e-06, %v78_v21 }
  0x8b   :  { %v82_v24 = vmul.f32 %v1886_v22, %v79_v19  ;;  %vm88_vm2 = vweird.f32 %v1886_v22 }
  0x8c   :  { %1887 = vrsqrt.f32 %v80_v23  ;;  %vm89_vm4 = vmor %vm87_vm3, %vm88_vm2  ;;  %vm97_vm6 = vweird.f32 %v80_v23 }
  0x8d   :  { %v83_v25 = vmul.f32 %v1886_v22, %v82_v24 }
  0x8f   :  { %v84_v26 = vmul.f32 0.5, %v83_v25 }
  0x91   :  { %v85_v27 = vsub.f32 1.5, %v84_v26 }
  0x92   :  { %v1888_v29 = vpop.eup %1887 }
  0x93   :  { %v86_v30 = vmul.f32 %v1886_v22, %v85_v27  ;;  %v92_v31 = vmul.f32 %v1888_v29, %v80_v23  ;;  %vm98_vm5 = vweird.f32 %v1888_v29  ;;  %v2193_v27 = vld [vmem:[%s2647_s1] sm:$0xff] }
  0x94   :  { %vm99_vm7 = vmor %vm97_vm6, %vm98_vm5 }
  0x95   :  { %v93_v33 = vmul.f32 %v1888_v29, %v92_v31  ;;  %v90_v34 = vsel %vm89_vm4, %v1886_v22, %v86_v30  ;;  %v666_v30 = vmul.f32 %v2193_v27, %v2193_v27 }
  0x96   :  { %v101_v35 = vmul.f32 %v90_v34, %v2085_v0 }
  0x97   :  { %v94_v36 = vmul.f32 0.5, %v93_v33  ;;  %v668_v33 = vsel %vm63_vm0, %v666_v30, 0.0  ;;  %v140_v30 = vld [vmem:[%s2651_s5 + $0x8] sm:$0xff] }
  0x98   :  { %v104_v37 = vmul.f32 %v103_v32, %v101_v35 }
  0x99   :  { %v95_v38 = vsub.f32 1.5, %v94_v36 }
  0x9a   :  { %1788 = vmatmul.msk.f32.vlgmr.msra.gmra.mxu0 %vm63_vm0, %v104_v37 }
  0x9b   :  { %v96_v39 = vmul.f32 %v1888_v29, %v95_v38 }
  0x9d   :  { %v100_v40 = vsel %vm99_vm7, %v1888_v29, %v96_v39  ;;  %v2198_v29 = vld [vmem:[%s2647_s1 + $0x8] sm:$0xff] }
  0x9e   :  { %v102_v41 = vmul.f32 %v100_v40, %v2092_v2  ;;  %v667_v31 = vmul.f32 %v2198_v29, %v2198_v29 }
  0xa0   :  { %v105_v42 = vmul.f32 %v103_v32, %v102_v41  ;;  %v671_v34 = vsel %vm63_vm0, %v667_v31, 0.0  ;;  %v141_v31 = vld [vmem:[%s2651_s5 + $0x10] sm:$0xff] }
  0xa2   :  { %1789 = vmatmul.msk.f32.gmra.mxu0 %vm63_vm0, %v105_v42 }
 0x117   :  { %v2124_v43 = vpop.f32.mrf.mxu0 }
 0x118   :  { %301 = vrot.lane.b32.xlu2 %v2124_v43, %s1989_s20  ;;  %144 = vrot.lane.b32.xlu1 %v2124_v43, %s1990_s21 }
 0x11f   :  { %v2130_v44 = vpop.f32.mrf.mxu0 }
 0x120   :  { %299 = vrot.lane.b32.xlu2 %v2124_v43, %s1991_s22  ;;  %329 = vrot.lane.b32.xlu0 %v2130_v44, %s1989_s20 }
 0x121   :  { %172 = vrot.lane.b32.xlu1 %v2130_v44, %s1990_s21 }
 0x129   :  { %327 = vrot.lane.b32.xlu1 %v2130_v44, %s1991_s22 }
 0x172   :  { %v302_v45 = vpop.permute.xlu2 %301 }
 0x173   :  { %1796 = vmatpush.xpose.msk.msra.mxu1 %vm146_vm8, %v302_v45 }
 0x17a   :  { %v300_v46 = vpop.permute.xlu2 %299 }
 0x17b   :  { %1797 = vmatmul.msk.f32.vlgmr.msra.gmra.mxu1 %vm146_vm8, %v300_v46 }
 0x18a   :  { %v145_v47 = vpop.permute.xlu1 %144 }
 0x18b   :  { %1790 = vmatpush.xpose.msk.msra.mxu2 %vm146_vm8, %v145_v47 }
 0x18e   :  { %1791 = vmatmul.msk.f32.vlgmr.msra.gmra.mxu2 %vm146_vm8, %v2124_v43 }
 0x192   :  { %v330_v48 = vpop.permute.xlu0 %329 }
 0x193   :  { %v173_v49 = vpop.permute.xlu1 %172 }
 0x194   :  { %1792 = vmatpush.xpose.msk.msrb.mxu2 %vm146_vm8, %v173_v49 }
 0x197   :  { %1793 = vmatmul.msk.f32.vlgmr.msrb.gmra.mxu2 %vm146_vm8, %v2130_v44 }
 0x198   :  { %1798 = vmatpush.xpose.msk.msra.mxu2 %vm146_vm8, %v330_v48 }
 0x19b   :  { %v328_v50 = vpop.permute.xlu1 %327 }
 0x19f   :  { %1799 = vmatmul.msk.f32.vlgmr.msra.gmra.mxu2 %vm146_vm8, %v328_v50 }
 0x1f8   :  { %v324_v52 = vpop.f32.mrf.mxu1 }
 0x1f9   :  { %v325_v53 = vadd.f32 %v324_v52, %v56_v51 }
 0x1fb   :  { %v355_v54 = vsel %vm198_vm9, %v325_v53, -inf }
 0x1fc   :  { %356 = vmax.xlane.f32.xlu1 %v355_v54 }
 0x211   :  { %v168_v56 = vpop.f32.mrf.mxu2 }
 0x212   :  { %v169_v57 = vadd.f32 %v168_v56, %v55_v55 }
 0x214   :  { %v199_v58 = vsel %vm198_vm9, %v169_v57, -inf }
 0x215   :  { %200 = vmax.xlane.f32.xlu0 %v199_v58 }
 0x21a   :  { %v195_v59 = vpop.f32.mrf.mxu2 }
 0x21b   :  { %v196_v60 = vadd.f32 %v195_v59, %v55_v55 }
 0x21d   :  { %v202_v61 = vsel %vm198_vm9, %v196_v60, -inf }
 0x21e   :  { %203 = vmax.xlane.f32.xlu2 %v202_v61 }
 0x222   :  { %v352_v62 = vpop.f32.mrf.mxu2 }
 0x223   :  { %v353_v63 = vadd.f32 %v352_v62, %v56_v51 }
 0x225   :  { %v358_v1 = vsel %vm198_vm9, %v353_v63, -inf }
 0x226   :  { %359 = vmax.xlane.f32.xlu2 %v358_v1 }
 0x23e   :  { %273 = vrot.lane.b32.xlu2 %v2130_v44, %s1992_s27 }
 0x26f   :  { %v357_v3 = vpop.xlane.xlu1 %356 }
 0x270   :  { %v361_v4 = vsub.f32 %v325_v53, %v357_v3 }
 0x272   :  { %v363_v5 = vmul.f32 1.442695, %v361_v4 }
 0x274   :  { %1889 = vpow2.f32 %v363_v5 }
 0x27a   :  { %v2162_v6 = vpop.eup %1889 }
 0x27b   :  { %v367_v7 = vsel %vm198_vm9, %v2162_v6, 0.0 }
 0x27c   :  { %368 = vadd.xlane.f32.xlu1 %v367_v7 }
 0x288   :  { %v201_v8 = vpop.xlane.xlu0 %200 }
 0x289   :  { %v205_v9 = vsub.f32 %v169_v57, %v201_v8 }
 0x28b   :  { %v207_v10 = vmul.f32 1.442695, %v205_v9 }
 0x28d   :  { %1891 = vpow2.f32 %v207_v10 }
 0x291   :  { %v204_v11 = vpop.xlane.xlu2 %203 }
 0x292   :  { %v206_v12 = vsub.f32 %v196_v60, %v204_v11 }
 0x293   :  { %v2166_v13 = vpop.eup %1891 }
 0x294   :  { %v209_v14 = vmul.f32 1.442695, %v206_v12  ;;  %v211_v15 = vsel %vm198_vm9, %v2166_v13, 0.0 }
 0x295   :  { %212 = vadd.xlane.f32.xlu1 %v211_v15 }
 0x296   :  { %1893 = vpow2.f32 %v209_v14 }
 0x299   :  { %v360_v17 = vpop.xlane.xlu2 %359 }
 0x29a   :  { %v362_v18 = vsub.f32 %v353_v63, %v360_v17 }
 0x29c   :  { %v2170_v19 = vpop.eup %1893  ;;  %v365_v20 = vmul.f32 1.442695, %v362_v18 }
 0x29d   :  { %v214_v21 = vsel %vm198_vm9, %v2170_v19, 0.0 }
 0x29e   :  { %1895 = vpow2.f32 %v365_v20  ;;  %215 = vadd.xlane.f32.xlu2 %v214_v21 }
 0x2a1   :  { %v274_v22 = vpop.permute.xlu2 %273 }
 0x2a2   :  { %294 = vmatpush.msra.mxu3 %v274_v22 }
 0x2a4   :  { %v2174_v23 = vpop.eup %1895 }
 0x2a5   :  { %v370_v24 = vsel %vm198_vm9, %v2174_v23, 0.0 }
 0x2a6   :  { %371 = vadd.xlane.f32.xlu0 %v370_v24 }
 0x2ae   :  { %403 = vrot.lane.b32.xlu1 %v2124_v43, %s1993_s28 }
 0x2b6   :  { %429 = vrot.lane.b32.xlu2 %v2130_v44, %s1993_s28 }
 0x2ba   :  { %247 = vrot.lane.b32.xlu0 %v2124_v43, %s1992_s27 }
 0x2df   :  { %669 = vadd.xlane.f32.xlu2 %v668_v33 }
 0x2e4   :  { %672 = vadd.xlane.f32.xlu0 %v671_v34 }
 0x2ef   :  { %v2184_v25 = vpop.xlane.xlu1 %368 }
 0x2f0   :  { %1897 = vrcp.f32 %v2184_v25  ;;  %vm378_vm12 = vweird.f32 %v2184_v25  ;;  %v384_v58 = vand.u32 2147483648, %v2184_v25  ;;  %v382_v61 = vand.u32 2147483647, %v2184_v25 }
 0x2f2   :  { %v385_v11 = vor.u32 1.1754944e-38, %v384_v58  ;;  %vm383_vm6 = vcmp.eq.f32.partialorder %v382_v61, 8.507059e+37 }
 0x2f6   :  { %v2206_v35 = vpop.eup %1897 }
 0x2f7   :  { %v374_v37 = vmul.f32 %v2206_v35, %v2184_v25  ;;  %vm379_vm13 = vweird.f32 %v2206_v35 }
 0x2f8   :  { %vm2229_vm2 = vmor %vm378_vm12, %vm379_vm13 }
 0x2f9   :  { %v375_v40 = vsub.f32 1.0, %v374_v37  ;;  %v705_v37 = vld [vmem:[%s2654_s8 + $0x10] sm:$0xff] }
 0x2fb   :  { %v376_v47 = vmul.f32 %v2206_v35, %v375_v40  ;;  %v703_v40 = vld [vmem:[%s2654_s8] sm:$0xff] }
 0x2fd   :  { %v377_v55 = vadd.f32 %v2206_v35, %v376_v47 }
 0x2ff   :  { %v381_v10 = vsel %vm2229_vm2, %v2206_v35, %v377_v55 }
 0x300   :  { %v386_v18 = vsel %vm383_vm6, %v385_v11, %v381_v10 }
 0x301   :  { %v401_v22 = vmul.f32 %v2162_v6, %v386_v18  ;;  %v139_v6 = vld [vmem:[%s2651_s5] sm:$0xff]  ;;  %v554_v18 = vld [vmem:[%s2652_s6 + $0x10] sm:$0xff] }
 0x308   :  { %v2186_v26 = vpop.xlane.xlu1 %212 }
 0x309   :  { %1899 = vrcp.f32 %v2186_v26  ;;  %v228_v62 = vand.u32 2147483648, %v2186_v26  ;;  %vm222_vm3 = vweird.f32 %v2186_v26  ;;  %v226_v4 = vand.u32 2147483647, %v2186_v26 }
 0x30b   :  { %v229_v14 = vor.u32 1.1754944e-38, %v228_v62 }
 0x30f   :  { %v2208_v36 = vpop.eup %1899 }
 0x310   :  { %v218_v38 = vmul.f32 %v2208_v36, %v2186_v26  ;;  %vm223_vm1 = vweird.f32 %v2208_v36 }
 0x311   :  { %v216_v32 = vpop.xlane.xlu2 %215  ;;  %vm2235_vm4 = vmor %vm222_vm3, %vm223_vm1 }
 0x312   :  { %1901 = vrcp.f32 %v216_v32  ;;  %v219_v44 = vsub.f32 1.0, %v218_v38  ;;  %v242_v46 = vand.u32 2147483648, %v216_v32  ;;  %v240_v49 = vand.u32 2147483647, %v216_v32  ;;  %v704_v38 = vld [vmem:[%s2654_s8 + $0x8] sm:$0xff] }
 0x313   :  { %vm236_vm11 = vweird.f32 %v216_v32 }
 0x314   :  { %v220_v50 = vmul.f32 %v2208_v36, %v219_v44  ;;  %v243_v53 = vor.u32 1.1754944e-38, %v242_v46  ;;  %vm241_vm15 = vcmp.eq.f32.partialorder %v240_v49, 8.507059e+37 }
 0x316   :  { %v221_v59 = vadd.f32 %v2208_v36, %v220_v50 }
 0x318   :  { %v1902_v39 = vpop.eup %1901  ;;  %v225_v12 = vsel %vm2235_vm4, %v2208_v36, %v221_v59  ;;  %v706_v36 = vld [vmem:[%s2654_s8 + $0x18] sm:$0xff] }
 0x319   :  { %v232_v41 = vmul.f32 %v1902_v39, %v216_v32  ;;  %v372_v42 = vpop.xlane.xlu0 %371  ;;  %v430_v43 = vpop.permute.xlu2 %429  ;;  %vm237_vm10 = vweird.f32 %v1902_v39 }
 0x31a   :  { %1903 = vrcp.f32 %v372_v42  ;;  %450 = vmatpush.msrb.mxu1 %v430_v43  ;;  %vm238_vm14 = vmor %vm236_vm11, %vm237_vm10  ;;  %v398_v5 = vand.u32 2147483648, %v372_v42  ;;  %v396_v9 = vand.u32 2147483647, %v372_v42  ;;  %vm392_vm7 = vweird.f32 %v372_v42 }
 0x31b   :  { %v233_v45 = vsub.f32 1.0, %v232_v41  ;;  %vm227_vm10 = vcmp.eq.f32.partialorder %v226_v4, 8.507059e+37 }
 0x31c   :  { %v399_v17 = vor.u32 1.1754944e-38, %v398_v5  ;;  %vm397_vm12 = vcmp.eq.f32.partialorder %v396_v9, 8.507059e+37  ;;  %v230_v20 = vsel %vm227_vm10, %v229_v14, %v225_v12 }
 0x31d   :  { %v234_v48 = vmul.f32 %v1902_v39, %v233_v45  ;;  %v245_v26 = vmul.f32 %v2166_v13, %v230_v20  ;;  %v142_v13 = vld [vmem:[%s2651_s5 + $0x18] sm:$0xff]  ;;  %v552_v20 = vld [vmem:[%s2652_s6] sm:$0xff] }
 0x31e   :  { %475 = vmatpush.msrb.mxu2 %v142_v13  ;;  %v594_v13 = vld [vmem:[%s2653_s7 + $0x38] sm:$0xff] }
 0x31f   :  { %v235_v51 = vadd.f32 %v1902_v39, %v234_v48  ;;  %610 = vmatpush.msra.mxu1 %v594_v13 }
 0x320   :  { %v1904_v52 = vpop.eup %1903  ;;  %v404_v54 = vpop.permute.xlu1 %403  ;;  %476 = vmatpush.msrb.mxu2 %v141_v31 }
 0x321   :  { %v388_v56 = vmul.f32 %v1904_v52, %v372_v42  ;;  %424 = vmatpush.msrb.mxu3 %v404_v54  ;;  %v239_v57 = vsel %vm238_vm14, %v1902_v39, %v235_v51  ;;  %vm393_vm5 = vweird.f32 %v1904_v52 }
 0x322   :  { %v244_v60 = vsel %vm241_vm15, %v243_v53, %v239_v57  ;;  %vm394_vm11 = vmor %vm392_vm7, %vm393_vm5  ;;  %725 = vmatpush.msra.mxu2 %v706_v36  ;;  %v700_v57 = vperm.slane %v2117_v28, 3 }
 0x323   :  { %v389_v63 = vsub.f32 1.0, %v388_v56  ;;  %v246_v1 = vmul.f32 %v2170_v19, %v244_v60 }
 0x324   :  { %726 = vmatpush.msra.mxu2 %v705_v37 }
 0x325   :  { %v390_v8 = vmul.f32 %v1904_v52, %v389_v63  ;;  %1795 = vmatmul.msk.f32.vlgmr.msra.gmra.mxu3 %vm198_vm9, %v246_v1 }
 0x326   :  { %727 = vmatpush.msra.mxu2 %v704_v38  ;;  %v590_v38 = vld [vmem:[%s2653_s7 + $0x18] sm:$0xff] }
 0x327   :  { %v391_v15 = vadd.f32 %v1904_v52, %v390_v8 }
 0x328   :  { %728 = vmatpush.msra.mxu2 %v703_v40 }
 0x329   :  { %v395_v19 = vsel %vm394_vm11, %v1904_v52, %v391_v15 }
 0x32a   :  { %v400_v21 = vsel %vm397_vm12, %v399_v17, %v395_v19  ;;  %v553_v19 = vld [vmem:[%s2652_s6 + $0x8] sm:$0xff]  ;;  %vm595_vm12 = vcmask 523264  }
 0x32b   :  { %v402_v24 = vmul.f32 %v2174_v23, %v400_v21 }
 0x32c   :  { %v248_v25 = vpop.permute.xlu0 %247 }
 0x32d   :  { %268 = vmatpush.msrb.mxu0 %v248_v25  ;;  %1800 = vmatmul.msk.f32.vlgmr.msrb.gmra.mxu3 %vm198_vm9, %v401_v22 }
 0x32e   :  { %1801 = vmatmul.msk.f32.vlgmr.msrb.gmra.mxu1 %vm198_vm9, %v402_v24  ;;  %1794 = vmatmul.msk.f32.vlgmr.msrb.gmra.mxu0 %vm198_vm9, %v245_v26 }
 0x32f   :  { %504 = vmatpush.msra.mxu0 %v140_v30 }
 0x331   :  { %505 = vmatpush.msra.mxu0 %v139_v6 }
 0x352   :  { %v670_v23 = vpop.xlane.xlu2 %669 }
 0x353   :  { %v674_v32 = vmul.f32 %v670_v23, %v2110_v16  ;;  %v593_v23 = vld [vmem:[%s2653_s7 + $0x30] sm:$0xff] }
 0x354   :  { %611 = vmatpush.msra.mxu1 %v593_v23 }
 0x355   :  { %v676_v33 = vadd.f32 1e-06, %v674_v32  ;;  %v592_v32 = vld [vmem:[%s2653_s7 + $0x28] sm:$0xff] }
 0x356   :  { %612 = vmatpush.msra.mxu1 %v592_v32 }
 0x357   :  { %v673_v34 = vpop.xlane.xlu0 %672  ;;  %1905 = vrsqrt.f32 %v676_v33  ;;  %vm684_vm13 = vweird.f32 %v676_v33 }
 0x358   :  { %v675_v35 = vmul.f32 %v673_v34, %v2110_v16  ;;  %v591_v34 = vld [vmem:[%s2653_s7 + $0x20] sm:$0xff] }
 0x359   :  { %613 = vmatpush.msra.mxu1 %v591_v34 }
 0x35a   :  { %v677_v39 = vadd.f32 1e-06, %v675_v35 }
 0x35b   :  { %614 = vmatpush.msra.mxu1 %v590_v38 }
 0x35c   :  { %1907 = vrsqrt.f32 %v677_v39  ;;  %vm694_vm1 = vweird.f32 %v677_v39 }
 0x35d   :  { %v1906_v41 = vpop.eup %1905 }
 0x35e   :  { %v679_v42 = vmul.f32 %v1906_v41, %v676_v33  ;;  %vm685_vm14 = vweird.f32 %v1906_v41 }
 0x35f   :  { %vm686_vm15 = vmor %vm684_vm13, %vm685_vm14 }
 0x360   :  { %v680_v43 = vmul.f32 %v1906_v41, %v679_v42 }
 0x362   :  { %v1908_v44 = vpop.eup %1907  ;;  %v681_v46 = vmul.f32 0.5, %v680_v43 }
 0x363   :  { %v689_v47 = vmul.f32 %v1908_v44, %v677_v39  ;;  %vm695_vm2 = vweird.f32 %v1908_v44 }
 0x364   :  { %v682_v49 = vsub.f32 1.5, %v681_v46  ;;  %vm696_vm3 = vmor %vm694_vm1, %vm695_vm2 }
 0x365   :  { %v690_v50 = vmul.f32 %v1908_v44, %v689_v47 }
 0x366   :  { %v683_v52 = vmul.f32 %v1906_v41, %v682_v49  ;;  %v587_v49 = vld [vmem:[%s2653_s7] sm:$0xff] }
 0x367   :  { %v691_v53 = vmul.f32 0.5, %v690_v50 }
 0x368   :  { %v687_v54 = vsel %vm686_vm15, %v1906_v41, %v683_v52  ;;  %v589_v41 = vld [vmem:[%s2653_s7 + $0x10] sm:$0xff] }
 0x369   :  { %v692_v55 = vsub.f32 1.5, %v691_v53  ;;  %v698_v58 = vmul.f32 %v687_v54, %v2193_v27  ;;  %615 = vmatpush.msra.mxu1 %v589_v41 }
 0x36b   :  { %v693_v59 = vmul.f32 %v1908_v44, %v692_v55  ;;  %v701_v60 = vmul.f32 %v700_v57, %v698_v58 }
 0x36d   :  { %v697_v61 = vsel %vm696_vm3, %v1908_v44, %v693_v59  ;;  %v549_v44 = vperm.slane %v2117_v28, 1  ;;  %v57_v59 = vld [vmem:[%s2648_s2 + $0x10] sm:$0xff] }
 0x36e   :  { %v699_v62 = vmul.f32 %v697_v61, %v2198_v29 }
 0x370   :  { %v702_v63 = vmul.f32 %v700_v57, %v699_v62  ;;  %v58_v62 = vld [vmem:[%s2648_s2 + $0x18] sm:$0xff] }
 0x3a8   :  { %v296_v45 = vpop.f32.mrf.mxu3 }
 0x3ab   :  { %v270_v48 = vpop.f32.mrf.mxu0  ;;  %v452_v56 = vpop.f32.mrf.mxu1 }
 0x3ac   :  { %1804 = vmatmul.msk.f32.vlgmr.msra.gmra.mxu0 %vm146_vm8, %v270_v48 }
 0x3b0   :  { %v426_v51 = vpop.f32.mrf.mxu3 }
 0x3b1   :  { %1802 = vmatmul.msk.f32.vlgmr.msrb.gmra.mxu2 %vm146_vm8, %v426_v51 }
 0x3b4   :  { %1805 = vmatmul.msk.f32.gmra.mxu0 %vm146_vm8, %v296_v45  ;;  %v588_v45 = vld [vmem:[%s2653_s7 + $0x8] sm:$0xff] }
 0x3b5   :  { %616 = vmatpush.msra.mxu1 %v588_v45 }
 0x3b7   :  { %617 = vmatpush.msra.mxu1 %v587_v49 }
 0x3b9   :  { %1803 = vmatmul.msk.f32.gmra.mxu2 %vm146_vm8, %v452_v56 }
 0x3c1   :  { %1810 = vmatmul.msk.f32.vlgmr.msra.gmra.mxu2 %vm63_vm0, %v701_v60 }
 0x3c9   :  { %1811 = vmatmul.msk.f32.gmra.mxu2 %vm63_vm0, %v702_v63 }
 0x429   :  { %v507_v1 = vpop.f32.mrf.mxu0 }
 0x431   :  { %v510_v9 = vpop.f32.mrf.mxu0 }
 0x434   :  { %v478_v3 = vpop.f32.mrf.mxu2 }
 0x435   :  { %v508_v4 = vadd.f32 %v507_v1, %v478_v3 }
 0x437   :  { %v2288_v5 = vadd.f32 %v508_v4, %v2085_v0 }
 0x439   :  { %v515_v7 = vmul.f32 %v2288_v5, %v2288_v5 }
 0x43b   :  { %v517_v8 = vsel %vm63_vm0, %v515_v7, 0.0 }
 0x43c   :  { %518 = vadd.xlane.f32.xlu1 %v517_v8  ;;  %v481_v10 = vpop.f32.mrf.mxu2 }
 0x43d   :  { %v511_v11 = vadd.f32 %v510_v9, %v481_v10 }
 0x43f   :  { %v2294_v12 = vadd.f32 %v511_v11, %v2092_v2  ;;  %v555_v2 = vld [vmem:[%s2652_s6 + $0x18] sm:$0xff] }
 0x440   :  { %574 = vmatpush.msra.mxu3 %v555_v2 }
 0x441   :  { %v516_v14 = vmul.f32 %v2294_v12, %v2294_v12 }
 0x442   :  { %575 = vmatpush.msra.mxu3 %v554_v18 }
 0x443   :  { %v520_v15 = vsel %vm63_vm0, %v516_v14, 0.0 }
 0x444   :  { %521 = vadd.xlane.f32.xlu2 %v520_v15  ;;  %v2299_v0 = vpop.f32.mrf.mxu2  ;;  %576 = vmatpush.msra.mxu3 %v553_v19 }
 0x446   :  { %577 = vmatpush.msra.mxu3 %v552_v20 }
 0x44c   :  { %v2301_v17 = vpop.f32.mrf.mxu2 }
 0x44d   :  { %768 = vrot.lane.b32.xlu0 %v2301_v17, %s1990_s21 }
 0x455   :  { %741 = vrot.lane.b32.xlu1 %v2299_v0, %s1990_s21  ;;  %922 = vrot.lane.b32.xlu0 %v2301_v17, %s1991_s22 }
 0x45c   :  { %924 = vrot.lane.b32.xlu2 %v2301_v17, %s1989_s20 }
 0x45d   :  { %896 = vrot.lane.b32.xlu1 %v2299_v0, %s1989_s20  ;;  %894 = vrot.lane.b32.xlu0 %v2299_v0, %s1991_s22 }
 0x4af   :  { %v519_v21 = vpop.xlane.xlu1 %518 }
 0x4b0   :  { %v523_v22 = vmul.f32 %v519_v21, %v2110_v16 }
 0x4b2   :  { %v525_v24 = vadd.f32 1e-06, %v523_v22 }
 0x4b4   :  { %1909 = vrsqrt.f32 %v525_v24  ;;  %vm533_vm5 = vweird.f32 %v525_v24 }
 0x4b7   :  { %v522_v25 = vpop.xlane.xlu2 %521 }
 0x4b8   :  { %v524_v26 = vmul.f32 %v522_v25, %v2110_v16 }
 0x4ba   :  { %v1910_v30 = vpop.eup %1909  ;;  %v526_v6 = vadd.f32 1e-06, %v524_v26 }
 0x4bb   :  { %v528_v31 = vmul.f32 %v1910_v30, %v525_v24  ;;  %vm534_vm4 = vweird.f32 %v1910_v30 }
 0x4bc   :  { %1911 = vrsqrt.f32 %v526_v6  ;;  %vm535_vm6 = vmor %vm533_vm5, %vm534_vm4  ;;  %vm543_vm10 = vweird.f32 %v526_v6 }
 0x4bd   :  { %v529_v33 = vmul.f32 %v1910_v30, %v528_v31 }
 0x4bf   :  { %v530_v35 = vmul.f32 0.5, %v529_v33  ;;  %v769_v36 = vpop.permute.xlu0 %768  ;;  %v925_v37 = vpop.permute.xlu2 %924 }
 0x4c0   :  { %1820 = vmatpush.xpose.msk.msrb.mxu2 %vm146_vm8, %v925_v37  ;;  %1814 = vmatpush.xpose.msk.msrb.mxu3 %vm146_vm8, %v769_v36 }
 0x4c1   :  { %v531_v39 = vsub.f32 1.5, %v530_v35 }
 0x4c2   :  { %v1912_v40 = vpop.eup %1911 }
 0x4c3   :  { %v532_v42 = vmul.f32 %v1910_v30, %v531_v39  ;;  %v538_v43 = vmul.f32 %v1912_v40, %v526_v6  ;;  %vm544_vm7 = vweird.f32 %v1912_v40 }
 0x4c4   :  { %vm545_vm11 = vmor %vm543_vm10, %vm544_vm7 }
 0x4c5   :  { %v536_v46 = vsel %vm535_vm6, %v1910_v30, %v532_v42  ;;  %v539_v47 = vmul.f32 %v1912_v40, %v538_v43 }
 0x4c6   :  { %v547_v48 = vmul.f32 %v536_v46, %v2288_v5 }
 0x4c7   :  { %v540_v50 = vmul.f32 0.5, %v539_v47  ;;  %v742_v51 = vpop.permute.xlu1 %741  ;;  %v923_v52 = vpop.permute.xlu0 %922 }
 0x4c8   :  { %v550_v53 = vmul.f32 %v549_v44, %v547_v48  ;;  %1812 = vmatpush.xpose.msk.msrb.mxu0 %vm146_vm8, %v742_v51  ;;  %1821 = vmatmul.msk.f32.vlgmr.msrb.gmra.mxu2 %vm146_vm8, %v923_v52 }
 0x4c9   :  { %v541_v28 = vsub.f32 1.5, %v540_v50 }
 0x4ca   :  { %1806 = vmatmul.msk.f32.vlgmr.msra.gmra.mxu3 %vm63_vm0, %v550_v53 }
 0x4cb   :  { %v542_v54 = vmul.f32 %v1912_v40, %v541_v28  ;;  %1813 = vmatmul.msk.f32.vlgmr.msrb.gmra.mxu0 %vm146_vm8, %v2299_v0 }
 0x4cd   :  { %v546_v55 = vsel %vm545_vm11, %v1912_v40, %v542_v54 }
 0x4ce   :  { %v548_v56 = vmul.f32 %v546_v55, %v2294_v12 }
 0x4cf   :  { %v897_v57 = vpop.permute.xlu1 %896  ;;  %v895_v15 = vpop.permute.xlu0 %894 }
 0x4d0   :  { %v551_v58 = vmul.f32 %v549_v44, %v548_v56  ;;  %1818 = vmatpush.xpose.msk.msrb.mxu1 %vm146_vm8, %v897_v57 }
 0x4d2   :  { %1807 = vmatmul.msk.f32.gmra.mxu3 %vm63_vm0, %v551_v58 }
 0x4da   :  { %1815 = vmatmul.msk.f32.vlgmr.msrb.gmra.mxu3 %vm146_vm8, %v2301_v17 }
 0x548   :  { %v764_v60 = vpop.f32.mrf.mxu0 }
 0x549   :  { %v765_v61 = vadd.f32 %v764_v60, %v57_v59 }
 0x54b   :  { %v794_v63 = vsel %vm198_vm9, %v765_v61, -inf  ;;  %v947_v1 = vpop.f32.mrf.mxu2 }
 0x54c   :  { %795 = vmax.xlane.f32.xlu2 %v794_v63  ;;  %v948_v4 = vadd.f32 %v947_v1, %v58_v62 }
 0x54d   :  { %v579_v3 = vpop.f32.mrf.mxu3 }
 0x54e   :  { %v585_v7 = vmax.f32 %v579_v3, 0.0  ;;  %v953_v8 = vsel %vm198_vm9, %v948_v4, -inf }
 0x550   :  { %1808 = vmatmul.msk.f32.vlgmr.msra.gmra.mxu1 %vm595_vm12, %v585_v7 }
 0x554   :  { %954 = vmax.xlane.f32.xlu2 %v953_v8 }
 0x555   :  { %v582_v9 = vpop.f32.mrf.mxu3 }
 0x556   :  { %v586_v10 = vmax.f32 %v582_v9, 0.0 }
 0x558   :  { %1809 = vmatmul.msk.f32.gmra.mxu1 %vm595_vm12, %v586_v10 }
 0x55d   :  { %v791_v11 = vpop.f32.mrf.mxu3 }
 0x55e   :  { %v792_v14 = vadd.f32 %v791_v11, %v57_v59 }
 0x560   :  { %1819 = vmatmul.msk.f32.vlgmr.msrb.gmra.mxu1 %vm146_vm8, %v895_v15  ;;  %v797_v2 = vsel %vm198_vm9, %v792_v14, -inf }
 0x561   :  { %798 = vmax.xlane.f32.xlu1 %v797_v2 }
 0x5bf   :  { %v796_v18 = vpop.xlane.xlu2 %795 }
 0x5c0   :  { %v800_v19 = vsub.f32 %v765_v61, %v796_v18 }
 0x5c2   :  { %v802_v20 = vmul.f32 1.442695, %v800_v19 }
 0x5c4   :  { %1913 = vpow2.f32 %v802_v20 }
 0x5c7   :  { %v955_v21 = vpop.xlane.xlu2 %954 }
 0x5c8   :  { %v957_v22 = vsub.f32 %v948_v4, %v955_v21 }
 0x5ca   :  { %v2379_v24 = vpop.eup %1913  ;;  %v960_v25 = vmul.f32 1.442695, %v957_v22 }
 0x5cb   :  { %v806_v26 = vsel %vm198_vm9, %v2379_v24, 0.0 }
 0x5cc   :  { %1915 = vpow2.f32 %v960_v25  ;;  %807 = vadd.xlane.f32.xlu1 %v806_v26 }
 0x5cd   :  { %v619_v30 = vpop.f32.mrf.mxu1 }
 0x5ce   :  { %v2386_v13 = vadd.f32 %v619_v30, %v2288_v5  ;;  %v737_v30 = vld [vmem:[%s2655_s9 + $0x8] sm:$0xff] }
 0x5cf   :  { %1099 = vmatpush.msra.mxu2 %v737_v30 }
 0x5d0   :  { %v627_v34 = vmul.f32 %v2386_v13, %v2386_v13 }
 0x5d2   :  { %v2383_v6 = vpop.eup %1915  ;;  %v629_v37 = vsel %vm63_vm0, %v627_v34, 0.0 }
 0x5d3   :  { %v965_v23 = vsel %vm198_vm9, %v2383_v6, 0.0 }
 0x5d4   :  { %v799_v31 = vpop.xlane.xlu1 %798  ;;  %966 = vadd.xlane.f32.xlu1 %v965_v23 }
 0x5d5   :  { %v622_v32 = vpop.f32.mrf.mxu1  ;;  %v801_v33 = vsub.f32 %v792_v14, %v799_v31 }
 0x5d6   :  { %v2393_v36 = vadd.f32 %v622_v32, %v2294_v12  ;;  %v1863_v12 = vpack.i.bf16 %v2301_v17, %v2299_v0 }
 0x5d7   :  { %v804_v35 = vmul.f32 1.442695, %v801_v33 }
 0x5d8   :  { %v628_v39 = vmul.f32 %v2393_v36, %v2393_v36 }
 0x5d9   :  { %1917 = vpow2.f32 %v804_v35  ;;  %v736_v35 = vld [vmem:[%s2655_s9] sm:$0xff] }
 0x5da   :  { %v632_v41 = vsel %vm63_vm0, %v628_v39, 0.0  ;;  %1100 = vmatpush.msra.mxu2 %v736_v35 }
 0x5dc   :  { %630 = vadd.xlane.f32.xlu1 %v629_v37 }
 0x5dd   :  { %v919_v38 = vpop.f32.mrf.mxu1 }
 0x5de   :  { %v920_v5 = vadd.f32 %v919_v38, %v58_v62 }
 0x5df   :  { %v1918_v42 = vpop.eup %1917 }
 0x5e0   :  { %v950_v40 = vsel %vm198_vm9, %v920_v5, -inf  ;;  %v809_v43 = vsel %vm198_vm9, %v1918_v42, 0.0 }
 0x5e1   :  { %951 = vmax.xlane.f32.xlu0 %v950_v40 }
 0x5e4   :  { %633 = vadd.xlane.f32.xlu1 %v632_v41 }
 0x5e9   :  { %810 = vadd.xlane.f32.xlu0 %v809_v43 }
 0x5fd   :  { %1864 = vrot.lane.b32.xlu0 %v1863_v12, %s1992_s27 }
 0x63f   :  { %v808_v44 = vpop.xlane.xlu1 %807 }
 0x640   :  { %1919 = vrcp.f32 %v808_v44  ;;  %v823_v56 = vand.u32 2147483648, %v808_v44  ;;  %vm817_vm15 = vweird.f32 %v808_v44  ;;  %v821_v59 = vand.u32 2147483647, %v808_v44 }
 0x642   :  { %v824_v63 = vor.u32 1.1754944e-38, %v823_v56  ;;  %vm822_vm4 = vcmp.eq.f32.partialorder %v821_v59, 8.507059e+37 }
 0x646   :  { %v1920_v48 = vpop.eup %1919 }
 0x647   :  { %v813_v49 = vmul.f32 %v1920_v48, %v808_v44  ;;  %vm818_vm13 = vweird.f32 %v1920_v48  ;;  %v967_v15 = vpop.xlane.xlu1 %966 }
 0x648   :  { %vm819_vm1 = vmor %vm817_vm15, %vm818_vm13  ;;  %v993_v40 = vand.u32 2147483648, %v967_v15  ;;  %vm987_vm7 = vweird.f32 %v967_v15  ;;  %v991_v41 = vand.u32 2147483647, %v967_v15 }
 0x649   :  { %v814_v52 = vsub.f32 1.0, %v813_v49 }
 0x64a   :  { %v994_v44 = vor.u32 1.1754944e-38, %v993_v40  ;;  %vm992_vm11 = vcmp.eq.f32.partialorder %v991_v41, 8.507059e+37  ;;  %v1149_v40 = vld [vmem:[%s2656_s10 + $0x10] sm:$0xff]  ;;  %v1147_v41 = vld [vmem:[%s2656_s10] sm:$0xff] }
 0x64b   :  { %v815_v17 = vmul.f32 %v1920_v48, %v814_v52 }
 0x64d   :  { %v816_v55 = vadd.f32 %v1920_v48, %v815_v17 }
 0x64f   :  { %v820_v62 = vsel %vm819_vm1, %v1920_v48, %v816_v55  ;;  %v631_v2 = vpop.xlane.xlu1 %630 }
 0x650   :  { %v825_v4 = vsel %vm822_vm4, %v824_v63, %v820_v62  ;;  %v635_v18 = vmul.f32 %v631_v2, %v2110_v16 }
 0x651   :  { %v840_v11 = vmul.f32 %v2379_v24, %v825_v4 }
 0x652   :  { %v637_v19 = vadd.f32 1e-06, %v635_v18 }
 0x654   :  { %v952_v45 = vpop.xlane.xlu0 %951 }
 0x655   :  { %v956_v46 = vsub.f32 %v920_v5, %v952_v45 }
 0x657   :  { %v958_v47 = vmul.f32 1.442695, %v956_v46  ;;  %v634_v20 = vpop.xlane.xlu1 %633 }
 0x658   :  { %v636_v21 = vmul.f32 %v634_v20, %v2110_v16 }
 0x659   :  { %1921 = vpow2.f32 %v958_v47 }
 0x65a   :  { %v2414_v24 = vadd.f32 1e-06, %v636_v21 }
 0x65c   :  { %v811_v50 = vpop.xlane.xlu0 %810 }
 0x65d   :  { %1923 = vrcp.f32 %v811_v50  ;;  %v837_v58 = vand.u32 2147483648, %v811_v50  ;;  %v835_v60 = vand.u32 2147483647, %v811_v50  ;;  %vm831_vm2 = vweird.f32 %v811_v50 }
 0x65e   :  { %1925 = vrcp.f32 %v967_v15 }
 0x65f   :  { %v2404_v51 = vpop.eup %1921  ;;  %v838_v3 = vor.u32 1.1754944e-38, %v837_v58  ;;  %vm836_vm5 = vcmp.eq.f32.partialorder %v835_v60, 8.507059e+37  ;;  %1927 = vrsqrt.f32 %v637_v19  ;;  %v2445_v60 = vld [vmem:[%s2649_s3] sm:$0xff] }
 0x660   :  { %v962_v53 = vsel %vm198_vm9, %v2404_v51, 0.0  ;;  %1929 = vrsqrt.f32 %v2414_v24 }
 0x661   :  { %963 = vadd.xlane.f32.xlu2 %v962_v53 }
 0x663   :  { %v1924_v0 = vpop.eup %1923 }
 0x664   :  { %v827_v28 = vmul.f32 %v1924_v0, %v811_v50  ;;  %vm832_vm14 = vweird.f32 %v1924_v0  ;;  %v1926_v22 = vpop.eup %1925 }
 0x665   :  { %vm833_vm3 = vmor %vm831_vm2, %vm832_vm14  ;;  %v1928_v25 = vpop.eup %1927  ;;  %v983_v26 = vmul.f32 %v1926_v22, %v967_v15  ;;  %vm988_vm6 = vweird.f32 %v1926_v22  ;;  %vm645_vm14 = vweird.f32 %v637_v19 }
 0x666   :  { %v828_v54 = vsub.f32 1.0, %v827_v28  ;;  %v640_v23 = vmul.f32 %v1928_v25, %v637_v19  ;;  %v2420_v33 = vpop.eup %1929  ;;  %vm989_vm10 = vmor %vm987_vm7, %vm988_vm6  ;;  %vm646_vm13 = vweird.f32 %v1928_v25  ;;  %vm655_vm6 = vweird.f32 %v2414_v24  ;;  %v738_v19 = vld [vmem:[%s2655_s9 + $0x10] sm:$0xff] }
 0x667   :  { %v984_v31 = vsub.f32 1.0, %v983_v26  ;;  %v650_v38 = vmul.f32 %v2420_v33, %v2414_v24  ;;  %vm2428_vm15 = vmor %vm645_vm14, %vm646_vm13 }
 0x668   :  { %v829_v57 = vmul.f32 %v1924_v0, %v828_v54  ;;  %v641_v32 = vmul.f32 %v1928_v25, %v640_v23  ;;  %v1183_v54 = vld [vmem:[%s2657_s11 + $0x18] sm:$0xff] }
 0x669   :  { %v985_v34 = vmul.f32 %v1926_v22, %v984_v31  ;;  %v651_v43 = vmul.f32 %v2420_v33, %v650_v38 }
 0x66a   :  { %v830_v61 = vadd.f32 %v1924_v0, %v829_v57  ;;  %v642_v37 = vmul.f32 0.5, %v641_v32 }
 0x66b   :  { %v986_v5 = vadd.f32 %v1926_v22, %v985_v34  ;;  %v652_v48 = vmul.f32 0.5, %v651_v43 }
 0x66c   :  { %v834_v1 = vsel %vm833_vm3, %v1924_v0, %v830_v61  ;;  %v661_v61 = vperm.slane %v2445_v60, 2  ;;  %vm656_vm3 = vweird.f32 %v2420_v33 }
 0x66d   :  { %v839_v7 = vsel %vm836_vm5, %v838_v3, %v834_v1  ;;  %v653_v56 = vsub.f32 1.5, %v652_v48  ;;  %v1181_v1 = vld [vmem:[%s2657_s11 + $0x8] sm:$0xff]  ;;  %vm657_vm7 = vmor %vm655_vm6, %vm656_vm3 }
 0x66e   :  { %v841_v14 = vmul.f32 %v1918_v42, %v839_v7  ;;  %v643_v42 = vsub.f32 1.5, %v642_v37 }
 0x66f   :  { %v1865_v8 = vpop.permute.xlu0 %1864  ;;  %v654_v3 = vmul.f32 %v2420_v33, %v653_v56 }
 0x670   :  { %v1867_v9 = vunpack.i.h.bf16 %v1865_v8  ;;  %v1866_v10 = vunpack.i.l.bf16 %v1865_v8  ;;  %v644_v47 = vmul.f32 %v1928_v25, %v643_v42  ;;  %v1180_v8 = vld [vmem:[%s2657_s11] sm:$0xff] }
 0x672   :  { %863 = vmatpush.msra.mxu0 %v1866_v10  ;;  %889 = vmatpush.msra.mxu3 %v1867_v9  ;;  %v648_v55 = vsel %vm2428_vm15, %v1928_v25, %v644_v47 }
 0x673   :  { %1816 = vmatmul.msk.f32.vlgmr.msra.gmra.mxu0 %vm198_vm9, %v840_v11  ;;  %1817 = vmatmul.msk.f32.vlgmr.msra.gmra.mxu3 %vm198_vm9, %v841_v14  ;;  %v659_v62 = vmul.f32 %v648_v55, %v2386_v13  ;;  %v658_v11 = vsel %vm657_vm7, %v2420_v33, %v654_v3 }
 0x674   :  { %v660_v14 = vmul.f32 %v658_v11, %v2393_v36 }
 0x675   :  { %v662_v9 = vmul.f32 %v661_v61, %v659_v62 }
 0x676   :  { %v663_v15 = vmul.f32 %v661_v61, %v660_v14 }
 0x679   :  { %1869 = vrot.lane.b32.xlu2 %v1863_v12, %s1993_s28  ;;  %v990_v12 = vsel %vm989_vm10, %v1926_v22, %v986_v5 }
 0x67a   :  { %v995_v46 = vsel %vm992_vm11, %v994_v44, %v990_v12 }
 0x67b   :  { %v997_v28 = vmul.f32 %v2383_v6, %v995_v46  ;;  %v1182_v6 = vld [vmem:[%s2657_s11 + $0x10] sm:$0xff]  ;;  %s1995_s11 = smov 128  }
 0x6d4   :  { %v964_v39 = vpop.xlane.xlu2 %963 }
 0x6d5   :  { %1931 = vrcp.f32 %v964_v39  ;;  %v979_v57 = vand.u32 2147483648, %v964_v39  ;;  %v977_v59 = vand.u32 2147483647, %v964_v39  ;;  %vm973_vm2 = vweird.f32 %v964_v39 }
 0x6d7   :  { %v980_v4 = vor.u32 1.1754944e-38, %v979_v57  ;;  %vm978_vm5 = vcmp.eq.f32.partialorder %v977_v59, 8.507059e+37 }
 0x6db   :  { %v1932_v45 = vpop.eup %1931 }
 0x6dc   :  { %v969_v49 = vmul.f32 %v1932_v45, %v964_v39  ;;  %v1870_v50 = vpop.permute.xlu2 %1869  ;;  %vm974_vm1 = vweird.f32 %v1932_v45 }
 0x6dd   :  { %v1872_v52 = vunpack.i.h.bf16 %v1870_v50  ;;  %v1871_v53 = vunpack.i.l.bf16 %v1870_v50  ;;  %vm975_vm4 = vmor %vm973_vm2, %vm974_vm1 }
 0x6de   :  { %v970_v17 = vsub.f32 1.0, %v969_v49 }
 0x6df   :  { %1019 = vmatpush.msrb.mxu0 %v1871_v53  ;;  %1045 = vmatpush.msrb.mxu3 %v1872_v52 }
 0x6e0   :  { %v971_v58 = vmul.f32 %v1932_v45, %v970_v17  ;;  %1823 = vmatmul.msk.f32.vlgmr.msrb.gmra.mxu3 %vm198_vm9, %v997_v28  ;;  %v1144_v28 = vperm.slane %v2445_v60, 4 }
 0x6e1   :  { %1202 = vmatpush.msra.mxu3 %v1183_v54 }
 0x6e2   :  { %v972_v63 = vadd.f32 %v1932_v45, %v971_v58 }
 0x6e3   :  { %1203 = vmatpush.msra.mxu3 %v1182_v6 }
 0x6e4   :  { %v976_v7 = vsel %vm975_vm4, %v1932_v45, %v972_v63 }
 0x6e5   :  { %v981_v13 = vsel %vm978_vm5, %v980_v4, %v976_v7  ;;  %1204 = vmatpush.msra.mxu3 %v1181_v1 }
 0x6e6   :  { %v996_v10 = vmul.f32 %v2404_v51, %v981_v13  ;;  %v739_v51 = vld [vmem:[%s2655_s9 + $0x18] sm:$0xff] }
 0x6e7   :  { %1205 = vmatpush.msra.mxu3 %v1180_v8  ;;  %1070 = vmatpush.msra.mxu1 %v739_v51 }
 0x6e8   :  { %1822 = vmatmul.msk.f32.vlgmr.msrb.gmra.mxu0 %vm198_vm9, %v996_v10  ;;  %1830 = vmatmul.msk.f32.vlgmr.msra.gmra.mxu3 %vm63_vm0, %v662_v9 }
 0x6e9   :  { %1071 = vmatpush.msra.mxu1 %v738_v19 }
 0x6f0   :  { %v865_v2 = vpop.f32.mrf.mxu0  ;;  %1831 = vmatmul.msk.f32.gmra.mxu3 %vm63_vm0, %v663_v15 }
 0x6f1   :  { %1826 = vmatmul.msk.f32.vlgmr.msra.gmra.mxu2 %vm146_vm8, %v865_v2 }
 0x6f6   :  { %v891_v18 = vpop.f32.mrf.mxu3 }
 0x6f9   :  { %1827 = vmatmul.msk.f32.gmra.mxu2 %vm146_vm8, %v891_v18 }
 0x763   :  { %v1047_v36 = vpop.f32.mrf.mxu3 }
 0x765   :  { %v1021_v20 = vpop.f32.mrf.mxu0 }
 0x766   :  { %1824 = vmatmul.msk.f32.vlgmr.msra.gmra.mxu1 %vm146_vm8, %v1021_v20 }
 0x76b   :  { %v2473_v21 = vpop.f32.mrf.mxu3 }
 0x76c   :  { %1832 = vmatpush.xpose.msk.msrb.mxu1 %vm146_vm8, %v2473_v21 }
 0x76e   :  { %1825 = vmatmul.msk.f32.gmra.mxu1 %vm146_vm8, %v1047_v36 }
 0x773   :  { %v2478_v22 = vpop.f32.mrf.mxu3 }
 0x774   :  { %1399 = vrot.lane.b32.xlu2 %v2478_v22, %s1991_s22  ;;  %1834 = vmatpush.xpose.msk.msrb.mxu2 %vm146_vm8, %v2478_v22  ;;  %v1102_v26 = vpop.f32.mrf.mxu2  ;;  %v1873_v11 = vpack.i.bf16 %v2478_v22, %v2473_v21 }
 0x77c   :  { %1371 = vrot.lane.b32.xlu2 %v2473_v21, %s1991_s22  ;;  %v1105_v34 = vpop.f32.mrf.mxu2 }
 0x7ce   :  { %v1400_v24 = vpop.permute.xlu2 %1399 }
 0x7cf   :  { %1840 = vmatpush.xpose.msk.msra.mxu2 %vm146_vm8, %v1400_v24 }
 0x7d6   :  { %v1372_v25 = vpop.permute.xlu2 %1371 }
 0x7d7   :  { %1838 = vmatpush.xpose.msk.msra.mxu1 %vm146_vm8, %v1372_v25 }
 0x7e3   :  { %v1073_v30 = vpop.f32.mrf.mxu1 }
 0x7e4   :  { %v1103_v23 = vadd.f32 %v1102_v26, %v1073_v30 }
 0x7e6   :  { %v2489_v31 = vadd.f32 %v1103_v23, %v2193_v27  ;;  %v1150_v27 = vld [vmem:[%s2656_s10 + $0x18] sm:$0xff] }
 0x7e7   :  { %1169 = vmatpush.msra.mxu0 %v1150_v27 }
 0x7e8   :  { %v1110_v32 = vmul.f32 %v2489_v31, %v2489_v31 }
 0x7e9   :  { %1170 = vmatpush.msra.mxu0 %v1149_v40 }
 0x7ea   :  { %v1112_v33 = vsel %vm63_vm0, %v1110_v32, 0.0 }
 0x7eb   :  { %1113 = vadd.xlane.f32.xlu0 %v1112_v33  ;;  %v1076_v35 = vpop.f32.mrf.mxu1 }
 0x7ec   :  { %v1106_v37 = vadd.f32 %v1105_v34, %v1076_v35 }
 0x7ee   :  { %v2495_v38 = vadd.f32 %v1106_v37, %v2198_v29  ;;  %v1148_v29 = vld [vmem:[%s2656_s10 + $0x8] sm:$0xff] }
 0x7ef   :  { %1171 = vmatpush.msra.mxu0 %v1148_v29 }
 0x7f0   :  { %v1111_v5 = vmul.f32 %v2495_v38, %v2495_v38 }
 0x7f1   :  { %1172 = vmatpush.msra.mxu0 %v1147_v41 }
 0x7f2   :  { %v1115_v39 = vsel %vm63_vm0, %v1111_v5, 0.0 }
 0x7f3   :  { %1116 = vadd.xlane.f32.xlu1 %v1115_v39 }
 0x85e   :  { %v1114_v42 = vpop.xlane.xlu0 %1113 }
 0x85f   :  { %v1118_v43 = vmul.f32 %v1114_v42, %v2110_v16 }
 0x861   :  { %v1120_v12 = vadd.f32 1e-06, %v1118_v43 }
 0x863   :  { %1933 = vrsqrt.f32 %v1120_v12  ;;  %vm1128_vm11 = vweird.f32 %v1120_v12 }
 0x866   :  { %v1117_v44 = vpop.xlane.xlu1 %1116 }
 0x867   :  { %v1119_v45 = vmul.f32 %v1117_v44, %v2110_v16 }
 0x869   :  { %v1934_v46 = vpop.eup %1933  ;;  %v1121_v47 = vadd.f32 1e-06, %v1119_v45 }
 0x86a   :  { %v1123_v48 = vmul.f32 %v1934_v46, %v1120_v12  ;;  %vm1129_vm10 = vweird.f32 %v1934_v46 }
 0x86b   :  { %1935 = vrsqrt.f32 %v1121_v47  ;;  %vm1130_vm13 = vmor %vm1128_vm11, %vm1129_vm10  ;;  %vm1138_vm15 = vweird.f32 %v1121_v47 }
 0x86c   :  { %v1124_v49 = vmul.f32 %v1934_v46, %v1123_v48 }
 0x86e   :  { %v1125_v50 = vmul.f32 0.5, %v1124_v49 }
 0x870   :  { %v1126_v52 = vsub.f32 1.5, %v1125_v50 }
 0x871   :  { %v1936_v53 = vpop.eup %1935 }
 0x872   :  { %v1127_v0 = vmul.f32 %v1934_v46, %v1126_v52  ;;  %v1133_v17 = vmul.f32 %v1936_v53, %v1121_v47  ;;  %vm1139_vm14 = vweird.f32 %v1936_v53 }
 0x873   :  { %vm1140_vm1 = vmor %vm1138_vm15, %vm1139_vm14 }
 0x874   :  { %v1131_v54 = vsel %vm1130_vm13, %v1934_v46, %v1127_v0  ;;  %v1134_v55 = vmul.f32 %v1936_v53, %v1133_v17 }
 0x875   :  { %v1142_v56 = vmul.f32 %v1131_v54, %v2489_v31 }
 0x876   :  { %v1135_v57 = vmul.f32 0.5, %v1134_v55 }
 0x877   :  { %v1145_v58 = vmul.f32 %v1144_v28, %v1142_v56 }
 0x878   :  { %v1136_v59 = vsub.f32 1.5, %v1135_v57 }
 0x879   :  { %1828 = vmatmul.msk.f32.vlgmr.msra.gmra.mxu0 %vm63_vm0, %v1145_v58 }
 0x87a   :  { %v1137_v6 = vmul.f32 %v1936_v53, %v1136_v59 }
 0x87c   :  { %v1141_v61 = vsel %vm1140_vm1, %v1936_v53, %v1137_v6 }
 0x87d   :  { %v1143_v62 = vmul.f32 %v1141_v61, %v2495_v38 }
 0x87f   :  { %v1146_v63 = vmul.f32 %v1144_v28, %v1143_v62 }
 0x881   :  { %1829 = vmatmul.msk.f32.gmra.mxu0 %vm63_vm0, %v1146_v63 }
 0x8f6   :  { %v1174_v1 = vpop.f32.mrf.mxu0 }
 0x8f7   :  { %1369 = vrot.lane.b32.xlu2 %v1174_v1, %s1991_s22  ;;  %1833 = vmatmul.msk.f32.vlgmr.msrb.gmra.mxu1 %vm146_vm8, %v1174_v1 }
 0x8fe   :  { %v1177_v3 = vpop.f32.mrf.mxu0 }
 0x8ff   :  { %1397 = vrot.lane.b32.xlu1 %v1177_v3, %s1991_s22  ;;  %1835 = vmatmul.msk.f32.vlgmr.msrb.gmra.mxu2 %vm146_vm8, %v1177_v3 }
 0x951   :  { %v1370_v4 = vpop.permute.xlu2 %1369 }
 0x952   :  { %1839 = vmatmul.msk.f32.vlgmr.msra.gmra.mxu1 %vm146_vm8, %v1370_v4 }
 0x971   :  { %v1398_v7 = vpop.permute.xlu1 %1397 }
 0x972   :  { %1841 = vmatmul.msk.f32.vlgmr.msra.gmra.mxu2 %vm146_vm8, %v1398_v7 }
 0x974   :  { %v1240_v8 = vpop.f32.mrf.mxu1 }
 0x975   :  { %v1269_v13 = vsel %vm198_vm9, %v1240_v8, -inf }
 0x976   :  { %1270 = vmax.xlane.f32.xlu2 %v1269_v13 }
 0x982   :  { %v1266_v9 = vpop.f32.mrf.mxu2 }
 0x983   :  { %v1272_v10 = vsel %vm198_vm9, %v1266_v9, -inf }
 0x984   :  { %1273 = vmax.xlane.f32.xlu1 %v1272_v10 }
 0x99d   :  { %1874 = vrot.lane.b32.xlu1 %v1873_v11, %s1990_s21 }
 0x9cf   :  { %v1394_v14 = vpop.f32.mrf.mxu1 }
 0x9d0   :  { %v1425_v15 = vsel %vm198_vm9, %v1394_v14, -inf }
 0x9d1   :  { %1426 = vmax.xlane.f32.xlu0 %v1425_v15 }
 0x9e9   :  { %v1271_v2 = vpop.xlane.xlu2 %1270 }
 0x9ea   :  { %v1275_v18 = vsub.f32 %v1240_v8, %v1271_v2 }
 0x9ec   :  { %v1277_v51 = vmul.f32 1.442695, %v1275_v18 }
 0x9ee   :  { %1937 = vpow2.f32 %v1277_v51 }
 0x9f4   :  { %v1938_v26 = vpop.eup %1937 }
 0x9f5   :  { %v1422_v19 = vpop.f32.mrf.mxu2  ;;  %v1281_v21 = vsel %vm198_vm9, %v1938_v26, 0.0 }
 0x9f6   :  { %v1428_v36 = vsel %vm198_vm9, %v1422_v19, -inf }
 0x9f7   :  { %1429 = vmax.xlane.f32.xlu0 %v1428_v36  ;;  %v1274_v20 = vpop.xlane.xlu1 %1273  ;;  %v1214_v36 = vld [vmem:[%s2658_s12 + $0x8] sm:$0xff] }
 0x9f8   :  { %v1276_v24 = vsub.f32 %v1266_v9, %v1274_v20  ;;  %1574 = vmatpush.msrb.mxu2 %v1214_v36  ;;  %v1213_v20 = vld [vmem:[%s2658_s12] sm:$0xff] }
 0x9fa   :  { %v1279_v25 = vmul.f32 1.442695, %v1276_v24  ;;  %1575 = vmatpush.msrb.mxu2 %v1213_v20 }
 0x9fc   :  { %1939 = vpow2.f32 %v1279_v25 }
 0x9ff   :  { %1282 = vadd.xlane.f32.xlu0 %v1281_v21  ;;  %v1216_v21 = vld [vmem:[%s2658_s12 + $0x18] sm:$0xff] }
 0xa00   :  { %1545 = vmatpush.msrb.mxu1 %v1216_v21  ;;  %v1658_v21 = vld [vmem:[%s2660_s14 + $0x8] sm:$0xff] }
 0xa02   :  { %v1940_v22 = vpop.eup %1939 }
 0xa03   :  { %v1284_v30 = vsel %vm198_vm9, %v1940_v22, 0.0 }
 0xa07   :  { %1285 = vadd.xlane.f32.xlu0 %v1284_v30 }
 0xa0f   :  { %v1875_v23 = vpop.permute.xlu1 %1874 }
 0xa10   :  { %v1877_v32 = vunpack.i.h.bf16 %v1875_v23  ;;  %v1876_v33 = vunpack.i.l.bf16 %v1875_v23 }
 0xa12   :  { %1338 = vmatpush.msrb.mxu0 %v1876_v33  ;;  %1364 = vmatpush.msrb.mxu3 %v1877_v32 }
 0xa44   :  { %v1427_v34 = vpop.xlane.xlu0 %1426 }
 0xa45   :  { %v1431_v35 = vsub.f32 %v1394_v14, %v1427_v34 }
 0xa47   :  { %v1433_v37 = vmul.f32 1.442695, %v1431_v35 }
 0xa49   :  { %1941 = vpow2.f32 %v1433_v37 }
 0xa4f   :  { %v2534_v5 = vpop.eup %1941 }
 0xa50   :  { %v1437_v39 = vsel %vm198_vm9, %v2534_v5, 0.0 }
 0xa51   :  { %1438 = vadd.xlane.f32.xlu2 %v1437_v39 }
 0xa69   :  { %1879 = vrot.lane.b32.xlu2 %v1873_v11, %s1989_s20 }
 0xa6a   :  { %v1430_v27 = vpop.xlane.xlu0 %1429 }
 0xa6b   :  { %v1432_v40 = vsub.f32 %v1422_v19, %v1430_v27 }
 0xa6d   :  { %v1435_v29 = vmul.f32 1.442695, %v1432_v40  ;;  %v1215_v40 = vld [vmem:[%s2658_s12 + $0x10] sm:$0xff] }
 0xa6e   :  { %1546 = vmatpush.msrb.mxu1 %v1215_v40 }
 0xa6f   :  { %1943 = vpow2.f32 %v1435_v29 }
 0xa72   :  { %v1283_v41 = vpop.xlane.xlu0 %1282 }
 0xa73   :  { %1945 = vrcp.f32 %v1283_v41  ;;  %v1298_v47 = vand.u32 2147483648, %v1283_v41  ;;  %v1296_v49 = vand.u32 2147483647, %v1283_v41  ;;  %vm1292_vm3 = vweird.f32 %v1283_v41 }
 0xa75   :  { %v2539_v42 = vpop.eup %1943  ;;  %v1299_v53 = vor.u32 1.1754944e-38, %v1298_v47  ;;  %vm1297_vm5 = vcmp.eq.f32.partialorder %v1296_v49, 8.507059e+37 }
 0xa76   :  { %v1440_v43 = vsel %vm198_vm9, %v2539_v42, 0.0 }
 0xa77   :  { %1441 = vadd.xlane.f32.xlu0 %v1440_v43 }
 0xa79   :  { %v1946_v12 = vpop.eup %1945 }
 0xa7a   :  { %v1288_v44 = vmul.f32 %v1946_v12, %v1283_v41  ;;  %v1286_v45 = vpop.xlane.xlu0 %1285  ;;  %vm1293_vm2 = vweird.f32 %v1946_v12 }
 0xa7b   :  { %1947 = vrcp.f32 %v1286_v45  ;;  %vm1294_vm4 = vmor %vm1292_vm3, %vm1293_vm2  ;;  %v1312_v56 = vand.u32 2147483648, %v1286_v45  ;;  %v1310_v58 = vand.u32 2147483647, %v1286_v45  ;;  %vm1306_vm7 = vweird.f32 %v1286_v45 }
 0xa7c   :  { %v1289_v46 = vsub.f32 1.0, %v1288_v44 }
 0xa7d   :  { %v1313_v6 = vor.u32 1.1754944e-38, %v1312_v56  ;;  %vm1311_vm11 = vcmp.eq.f32.partialorder %v1310_v58, 8.507059e+37 }
 0xa7e   :  { %v1290_v48 = vmul.f32 %v1946_v12, %v1289_v46 }
 0xa80   :  { %v1291_v50 = vadd.f32 %v1946_v12, %v1290_v48 }
 0xa81   :  { %v1948_v52 = vpop.eup %1947 }
 0xa82   :  { %v1295_v0 = vsel %vm1294_vm4, %v1946_v12, %v1291_v50  ;;  %v1302_v17 = vmul.f32 %v1948_v52, %v1286_v45  ;;  %vm1307_vm6 = vweird.f32 %v1948_v52 }
 0xa83   :  { %v1300_v28 = vsel %vm1297_vm5, %v1299_v53, %v1295_v0  ;;  %vm1308_vm10 = vmor %vm1306_vm7, %vm1307_vm6  ;;  %v1624_v0 = vld [vmem:[%s2659_s13 + $0x10] sm:$0xff] }
 0xa84   :  { %v1303_v54 = vsub.f32 1.0, %v1302_v17  ;;  %v1315_v55 = vmul.f32 %v1938_v26, %v1300_v28  ;;  %v1622_v17 = vld [vmem:[%s2659_s13] sm:$0xff] }
 0xa86   :  { %v1304_v57 = vmul.f32 %v1948_v52, %v1303_v54  ;;  %1836 = vmatmul.msk.f32.vlgmr.msrb.gmra.mxu0 %vm198_vm9, %v1315_v55 }
 0xa88   :  { %v1305_v59 = vadd.f32 %v1948_v52, %v1304_v57 }
 0xa8a   :  { %v1309_v61 = vsel %vm1308_vm10, %v1948_v52, %v1305_v59 }
 0xa8b   :  { %v1314_v62 = vsel %vm1311_vm11, %v1313_v6, %v1309_v61 }
 0xa8c   :  { %v1316_v63 = vmul.f32 %v1940_v22, %v1314_v62  ;;  %v1619_v62 = vperm.slane %v2445_v60, 5 }
 0xa8e   :  { %1837 = vmatmul.msk.f32.vlgmr.msrb.gmra.mxu3 %vm198_vm9, %v1316_v63 }
 0xac4   :  { %v1439_v1 = vpop.xlane.xlu2 %1438 }
 0xac5   :  { %1949 = vrcp.f32 %v1439_v1  ;;  %v1454_v10 = vand.u32 2147483648, %v1439_v1  ;;  %v1452_v14 = vand.u32 2147483647, %v1439_v1  ;;  %vm1448_vm14 = vweird.f32 %v1439_v1 }
 0xac7   :  { %v1455_v2 = vor.u32 1.1754944e-38, %v1454_v10  ;;  %vm1453_vm1 = vcmp.eq.f32.partialorder %v1452_v14, 8.507059e+37 }
 0xacb   :  { %v1950_v3 = vpop.eup %1949 }
 0xacc   :  { %v1444_v4 = vmul.f32 %v1950_v3, %v1439_v1  ;;  %v1880_v7 = vpop.permute.xlu2 %1879  ;;  %vm1449_vm13 = vweird.f32 %v1950_v3 }
 0xacd   :  { %v1882_v8 = vunpack.i.h.bf16 %v1880_v7  ;;  %v1881_v13 = vunpack.i.l.bf16 %v1880_v7  ;;  %vm1450_vm15 = vmor %vm1448_vm14, %vm1449_vm13  ;;  %v1663_v7 = vld [vmem:[%s2660_s14 + $0x30] sm:$0xff] }
 0xace   :  { %v1445_v9 = vsub.f32 1.0, %v1444_v4  ;;  %v1664_v4 = vld [vmem:[%s2660_s14 + $0x38] sm:$0xff] }
 0xacf   :  { %1494 = vmatpush.msra.mxu0 %v1881_v13  ;;  %1520 = vmatpush.msra.mxu3 %v1882_v8  ;;  %v1662_v8 = vld [vmem:[%s2660_s14 + $0x28] sm:$0xff]  ;;  %v1661_v13 = vld [vmem:[%s2660_s14 + $0x20] sm:$0xff] }
 0xad0   :  { %v1446_v11 = vmul.f32 %v1950_v3, %v1445_v9 }
 0xad1   :  { %1679 = vmatpush.msrb.mxu3 %v1664_v4 }
 0xad2   :  { %v1447_v15 = vadd.f32 %v1950_v3, %v1446_v11  ;;  %v1660_v11 = vld [vmem:[%s2660_s14 + $0x18] sm:$0xff] }
 0xad3   :  { %1680 = vmatpush.msrb.mxu3 %v1663_v7 }
 0xad4   :  { %v1451_v18 = vsel %vm1450_vm15, %v1950_v3, %v1447_v15  ;;  %v1659_v15 = vld [vmem:[%s2660_s14 + $0x10] sm:$0xff] }
 0xad5   :  { %v1456_v51 = vsel %vm1453_vm1, %v1455_v2, %v1451_v18  ;;  %1681 = vmatpush.msrb.mxu3 %v1662_v8 }
 0xad6   :  { %v1471_v19 = vmul.f32 %v2534_v5, %v1456_v51 }
 0xad7   :  { %1682 = vmatpush.msrb.mxu3 %v1661_v13 }
 0xad8   :  { %1842 = vmatmul.msk.f32.vlgmr.msra.gmra.mxu0 %vm198_vm9, %v1471_v19 }
 0xad9   :  { %1683 = vmatpush.msrb.mxu3 %v1660_v11 }
 0xadb   :  { %1684 = vmatpush.msrb.mxu3 %v1659_v15 }
 0xadd   :  { %1685 = vmatpush.msrb.mxu3 %v1658_v21 }
 0xaea   :  { %v1442_v24 = vpop.xlane.xlu0 %1441 }
 0xaeb   :  { %1951 = vrcp.f32 %v1442_v24  ;;  %v1468_v30 = vand.u32 2147483648, %v1442_v24  ;;  %v1466_v32 = vand.u32 2147483647, %v1442_v24  ;;  %vm1462_vm3 = vweird.f32 %v1442_v24 }
 0xaed   :  { %v1469_v34 = vor.u32 1.1754944e-38, %v1468_v30  ;;  %vm1467_vm5 = vcmp.eq.f32.partialorder %v1466_v32, 8.507059e+37 }
 0xaf1   :  { %v1952_v25 = vpop.eup %1951 }
 0xaf2   :  { %v1458_v26 = vmul.f32 %v1952_v25, %v1442_v24  ;;  %vm1463_vm2 = vweird.f32 %v1952_v25 }
 0xaf3   :  { %vm1464_vm4 = vmor %vm1462_vm3, %vm1463_vm2 }
 0xaf4   :  { %v1459_v22 = vsub.f32 1.0, %v1458_v26 }
 0xaf6   :  { %v1460_v23 = vmul.f32 %v1952_v25, %v1459_v22  ;;  %v1657_v22 = vld [vmem:[%s2660_s14] sm:$0xff] }
 0xaf7   :  { %1686 = vmatpush.msrb.mxu3 %v1657_v22 }
 0xaf8   :  { %v1461_v33 = vadd.f32 %v1952_v25, %v1460_v23 }
 0xafa   :  { %v1465_v35 = vsel %vm1464_vm4, %v1952_v25, %v1461_v33 }
 0xafb   :  { %v1470_v37 = vsel %vm1467_vm5, %v1469_v34, %v1465_v35 }
 0xafc   :  { %v1472_v5 = vmul.f32 %v2539_v42, %v1470_v37 }
 0xafe   :  { %1843 = vmatmul.msk.f32.vlgmr.msra.gmra.mxu3 %vm198_vm9, %v1472_v5 }
 0xb03   :  { %v1340_v39 = vpop.f32.mrf.mxu0 }
 0xb04   :  { %1846 = vmatmul.msk.f32.vlgmr.msrb.gmra.mxu2 %vm146_vm8, %v1340_v39 }
 0xb11   :  { %v1366_v27 = vpop.f32.mrf.mxu3 }
 0xb12   :  { %1847 = vmatmul.msk.f32.gmra.mxu2 %vm146_vm8, %v1366_v27 }
 0xb55   :  { %v1496_v29 = vpop.f32.mrf.mxu0 }
 0xb56   :  { %1844 = vmatmul.msk.f32.vlgmr.msrb.gmra.mxu1 %vm146_vm8, %v1496_v29 }
 0xb81   :  { %v1522_v41 = vpop.f32.mrf.mxu3 }
 0xb82   :  { %1845 = vmatmul.msk.f32.gmra.mxu1 %vm146_vm8, %v1522_v41  ;;  %v1738_v41 = vld [vmem:[%s2661_s15 + $0x18] sm:$0xff] }
 0xb83   :  { %1757 = vmatpush.msra.mxu1 %v1738_v41 }
 0xb87   :  { %v1577_v42 = vpop.f32.mrf.mxu2 }
 0xb95   :  { %v1580_v47 = vpop.f32.mrf.mxu2 }
 0xbd3   :  { %v1548_v43 = vpop.f32.mrf.mxu1 }
 0xbd4   :  { %v1578_v12 = vadd.f32 %v1577_v42, %v1548_v43  ;;  %v1737_v42 = vld [vmem:[%s2661_s15 + $0x10] sm:$0xff]  ;;  %v1736_v43 = vld [vmem:[%s2661_s15 + $0x8] sm:$0xff] }
 0xbd5   :  { %1758 = vmatpush.msra.mxu1 %v1737_v42 }
 0xbd6   :  { %v2566_v44 = vadd.f32 %v1578_v12, %v2489_v31  ;;  %v1625_v31 = vld [vmem:[%s2659_s13 + $0x18] sm:$0xff]  ;;  %v1735_v12 = vld [vmem:[%s2661_s15] sm:$0xff]  ;;  %s1994_s15 = smov [#allocation2]  }
 0xbd7   :  { %1644 = vmatpush.msrb.mxu0 %v1625_v31  ;;  %1759 = vmatpush.msra.mxu1 %v1736_v43  ;;  %v1730_v31 = vperm.slane %v2445_v60, 6  ;;  %s1774_s25 = sshll.u32 %s1994_s15, 4  ;;  %s1775_s25 = int_to_ptr.vmem [resolvable:$true] %s1774_s25 }
 0xbd8   :  { %v1585_v45 = vmul.f32 %v2566_v44, %v2566_v44 }
 0xbd9   :  { %1645 = vmatpush.msrb.mxu0 %v1624_v0  ;;  %1760 = vmatpush.msra.mxu1 %v1735_v12 }
 0xbda   :  { %v1587_v46 = vsel %vm63_vm0, %v1585_v45, 0.0 }
 0xbdb   :  { %1588 = vadd.xlane.f32.xlu0 %v1587_v46 }
 0xbff   :  { %v1551_v48 = vpop.f32.mrf.mxu1 }
 0xc00   :  { %v1581_v49 = vadd.f32 %v1580_v47, %v1551_v48 }
 0xc02   :  { %v2572_v50 = vadd.f32 %v1581_v49, %v2495_v38  ;;  %v1623_v38 = vld [vmem:[%s2659_s13 + $0x8] sm:$0xff]  ;;  %s1996_s13 = smov 8  }
 0xc03   :  { %1646 = vmatpush.msrb.mxu0 %v1623_v38 }
 0xc04   :  { %v1586_v52 = vmul.f32 %v2572_v50, %v2572_v50 }
 0xc05   :  { %1647 = vmatpush.msrb.mxu0 %v1622_v17 }
 0xc06   :  { %v1590_v53 = vsel %vm63_vm0, %v1586_v52, 0.0 }
 0xc07   :  { %1591 = vadd.xlane.f32.xlu0 %v1590_v53 }
 0xc4e   :  { %v1589_v28 = vpop.xlane.xlu0 %1588 }
 0xc4f   :  { %v1593_v54 = vmul.f32 %v1589_v28, %v2110_v16 }
 0xc51   :  { %v1595_v55 = vadd.f32 1e-06, %v1593_v54 }
 0xc53   :  { %1953 = vrsqrt.f32 %v1595_v55  ;;  %vm1603_vm9 = vweird.f32 %v1595_v55 }
 0xc59   :  { %v1954_v56 = vpop.eup %1953 }
 0xc5a   :  { %v1598_v57 = vmul.f32 %v1954_v56, %v1595_v55  ;;  %vm1604_vm8 = vweird.f32 %v1954_v56 }
 0xc5b   :  { %vm1605_vm6 = vmor %vm1603_vm9, %vm1604_vm8 }
 0xc5c   :  { %v1599_v58 = vmul.f32 %v1954_v56, %v1598_v57 }
 0xc5e   :  { %v1600_v59 = vmul.f32 0.5, %v1599_v58 }
 0xc60   :  { %v1601_v6 = vsub.f32 1.5, %v1600_v59 }
 0xc62   :  { %v1602_v61 = vmul.f32 %v1954_v56, %v1601_v6 }
 0xc64   :  { %v1606_v63 = vsel %vm1605_vm6, %v1954_v56, %v1602_v61 }
 0xc65   :  { %v1617_v1 = vmul.f32 %v1606_v63, %v2566_v44 }
 0xc67   :  { %v1620_v3 = vmul.f32 %v1619_v62, %v1617_v1 }
 0xc69   :  { %1848 = vmatmul.msk.f32.vlgmr.msrb.gmra.mxu0 %vm63_vm0, %v1620_v3 }
 0xc7a   :  { %v1592_v9 = vpop.xlane.xlu0 %1591 }
 0xc7b   :  { %v1594_v10 = vmul.f32 %v1592_v9, %v2110_v16 }
 0xc7d   :  { %v1596_v14 = vadd.f32 1e-06, %v1594_v10 }
 0xc7f   :  { %1955 = vrsqrt.f32 %v1596_v14  ;;  %vm1613_vm10 = vweird.f32 %v1596_v14 }
 0xc85   :  { %v1956_v2 = vpop.eup %1955 }
 0xc86   :  { %v1608_v18 = vmul.f32 %v1956_v2, %v1596_v14  ;;  %vm1614_vm7 = vweird.f32 %v1956_v2 }
 0xc87   :  { %vm1615_vm11 = vmor %vm1613_vm10, %vm1614_vm7 }
 0xc88   :  { %v1609_v51 = vmul.f32 %v1956_v2, %v1608_v18 }
 0xc8a   :  { %v1610_v19 = vmul.f32 0.5, %v1609_v51 }
 0xc8c   :  { %v1611_v36 = vsub.f32 1.5, %v1610_v19 }
 0xc8e   :  { %v1612_v20 = vmul.f32 %v1956_v2, %v1611_v36 }
 0xc90   :  { %v1616_v24 = vsel %vm1615_vm11, %v1956_v2, %v1612_v20 }
 0xc91   :  { %v1618_v25 = vmul.f32 %v1616_v24, %v2572_v50 }
 0xc93   :  { %v1621_v26 = vmul.f32 %v1619_v62, %v1618_v25 }
 0xc95   :  { %1849 = vmatmul.msk.f32.gmra.mxu0 %vm63_vm0, %v1621_v26 }
 0xce6   :  { %v1649_v30 = vpop.f32.mrf.mxu0 }
 0xce7   :  { %v1655_v23 = vmax.f32 %v1649_v30, 0.0 }
 0xce9   :  { %1850 = vmatmul.msk.f32.vlgmr.msrb.gmra.mxu3 %vm595_vm12, %v1655_v23 }
 0xd12   :  { %v1652_v32 = vpop.f32.mrf.mxu0 }
 0xd13   :  { %v1656_v33 = vmax.f32 %v1652_v32, 0.0 }
 0xd15   :  { %1851 = vmatmul.msk.f32.gmra.mxu3 %vm595_vm12, %v1656_v33 }
 0xd6c   :  { %v1688_v34 = vpop.f32.mrf.mxu3 }
 0xd6d   :  { %v1694_v35 = vadd.f32 %v1688_v34, %v2566_v44 }
 0xd6f   :  { %v1696_v37 = vmul.f32 %v1694_v35, %v1694_v35 }
 0xd71   :  { %v1698_v5 = vsel %vm63_vm0, %v1696_v37, 0.0 }
 0xd72   :  { %1699 = vadd.xlane.f32.xlu0 %v1698_v5 }
 0xd98   :  { %v1691_v39 = vpop.f32.mrf.mxu3 }
 0xd99   :  { %v1695_v27 = vadd.f32 %v1691_v39, %v2572_v50 }
 0xd9b   :  { %v1697_v40 = vmul.f32 %v1695_v27, %v1695_v27 }
 0xd9d   :  { %v1701_v29 = vsel %vm63_vm0, %v1697_v40, 0.0 }
 0xd9e   :  { %1702 = vadd.xlane.f32.xlu1 %v1701_v29 }
 0xde5   :  { %v1700_v44 = vpop.xlane.xlu0 %1699 }
 0xde6   :  { %v1704_v45 = vmul.f32 %v1700_v44, %v2110_v16 }
 0xde8   :  { %v1706_v46 = vadd.f32 1e-06, %v1704_v45 }
 0xdea   :  { %1957 = vrsqrt.f32 %v1706_v46  ;;  %vm1714_vm13 = vweird.f32 %v1706_v46 }
 0xdf0   :  { %v1958_v47 = vpop.eup %1957 }
 0xdf1   :  { %v1709_v48 = vmul.f32 %v1958_v47, %v1706_v46  ;;  %vm1715_vm12 = vweird.f32 %v1958_v47 }
 0xdf2   :  { %vm1716_vm14 = vmor %vm1714_vm13, %vm1715_vm12 }
 0xdf3   :  { %v1710_v49 = vmul.f32 %v1958_v47, %v1709_v48 }
 0xdf5   :  { %v1711_v50 = vmul.f32 0.5, %v1710_v49 }
 0xdf7   :  { %v1712_v52 = vsub.f32 1.5, %v1711_v50 }
 0xdf9   :  { %v1713_v53 = vmul.f32 %v1958_v47, %v1712_v52 }
 0xdfb   :  { %v1717_v0 = vsel %vm1716_vm14, %v1958_v47, %v1713_v53 }
 0xdfc   :  { %v1728_v38 = vmul.f32 %v1717_v0, %v1694_v35 }
 0xdfe   :  { %v1731_v17 = vmul.f32 %v1730_v31, %v1728_v38 }
 0xe00   :  { %v1733_v28 = vmul.f32 0.17677669, %v1731_v17 }
 0xe02   :  { %1852 = vmatmul.msk.f32.vlgmr.msra.gmra.mxu1 %vm63_vm0, %v1733_v28 }
 0xe11   :  { %v1703_v54 = vpop.xlane.xlu1 %1702 }
 0xe12   :  { %v1705_v55 = vmul.f32 %v1703_v54, %v2110_v16 }
 0xe14   :  { %v1707_v56 = vadd.f32 1e-06, %v1705_v55 }
 0xe16   :  { %1959 = vrsqrt.f32 %v1707_v56  ;;  %vm1724_vm1 = vweird.f32 %v1707_v56 }
 0xe1c   :  { %v1960_v57 = vpop.eup %1959 }
 0xe1d   :  { %v1719_v58 = vmul.f32 %v1960_v57, %v1707_v56  ;;  %vm1725_vm15 = vweird.f32 %v1960_v57 }
 0xe1e   :  { %vm1726_vm2 = vmor %vm1724_vm1, %vm1725_vm15 }
 0xe1f   :  { %v1720_v59 = vmul.f32 %v1960_v57, %v1719_v58 }
 0xe21   :  { %v1721_v6 = vmul.f32 0.5, %v1720_v59 }
 0xe23   :  { %v1722_v61 = vsub.f32 1.5, %v1721_v6 }
 0xe25   :  { %v1723_v62 = vmul.f32 %v1960_v57, %v1722_v61 }
 0xe27   :  { %v1727_v60 = vsel %vm1726_vm2, %v1960_v57, %v1723_v62 }
 0xe28   :  { %v1729_v63 = vmul.f32 %v1727_v60, %v1695_v27 }
 0xe2a   :  { %v1732_v1 = vmul.f32 %v1730_v31, %v1729_v63 }
 0xe2c   :  { %v1734_v3 = vmul.f32 0.17677669, %v1732_v1 }
 0xe2e   :  { %1853 = vmatmul.msk.f32.gmra.mxu1 %vm63_vm0, %v1734_v3 }
 0xe7f   :  { %v1762_v4 = vpop.f32.mrf.mxu1 }
 0xe80   :  { %1768 = vst [vmem:[#allocation2] sm:$0xff] %v1762_v4 }
 0xeab   :  { %v1765_v16 = vpop.f32.mrf.mxu1 }
 0xeac   :  { %1769 = vst [vmem:[#allocation2 + $0x8] sm:$0xff] %v1765_v16 }
 0xead   :  { %1782 = dma.vmem_to_hbm [thread:$0]  %s1775_s25, 256, %s1777_s29, [#allocation3], %s1995_s11, %s1995_s11, %s1996_s13  }
 0xeae   :  { %1986 = dma.done.wait [#allocation3], 256  }
 0xeaf   :  { %1987 = vsyncadd [#allocation3], 4294967040 }
 0xeb0   :  { %1787 = vsyncpa [#allocation3], 1 }

</bundles_post_ra>
